<compile_context>
chip_gen: v6e
topology: v6e:2x2x1
jax: 0.10.0
libtpu: 0.0.40
codegen_flags: <defaults>
</compile_context>

<pallas_src>
import numpy as np
import jax
import jax.numpy as jnp
from jax import lax
from jax.experimental import pallas as pl
from jax.experimental.pallas import tpu as pltpu


def _sigmoid(x):
    # tanh-form sigmoid: one EUP tanh instead of exp + divide on the VPU,
    # numerically safe for large |x|.
    return 0.5 * jnp.tanh(0.5 * x) + 0.5


def make_two_layer_rnn_kernel(T, BT, H, V, E):
    """Build the kernel for static (T, batch tile BT, H, V, E)."""
    f32 = jnp.float32
    bf16 = jnp.bfloat16
    H4 = 4 * H

    def kernel(x_ref, len_ref, wih1_ref, wrec_ref, bias_ref,
               wout_ref, bout_ref, out_ref, h2_scr):
        # ---- hoisted input projection: ONE (T*BT,E)@(E,8H) MXU call.
        #      cols 0:4H  = x @ wih1 + b1   (layer-1 input gates)
        #      cols 4H:8H = b2              (layer-2 bias, x part multiplied by 0)
        x2d = x_ref[...].reshape(T * BT, E)                       # bf16, tile-aligned collapse
        xw = (jnp.dot(x2d, wih1_ref[...], preferred_element_type=f32)
              + bias_ref[...])                                    # (T*BT, 8H) f32

        wrec = wrec_ref[...]                                      # (2H, 8H) bf16
        lenv = len_ref[...]                                       # (BT, 1) int32

        def cell(s_blk, g_pre, c):
            # PyTorch gate order i, f, g, o inside each 4H block.
            i = s_blk[:, 0 * H:1 * H]
            f = s_blk[:, 1 * H:2 * H]
            o = s_blk[:, 3 * H:4 * H]
            g = jnp.tanh(g_pre)
            c_new = f * c + i * g
            return o * jnp.tanh(c_new), c_new

        zeros = jnp.zeros((BT, H), f32)
        h1, c1, h2, c2 = zeros, zeros, zeros, zeros

        # Wavefronted, fully unrolled recurrence: iteration k runs layer-1 at
        # time k and layer-2 at time k-1 off a SINGLE fused MXU push
        #   [h1_{k-1} | h2_{k-2}] @ [[whh1, wih2], [0, whh2]] -> (BT, 8H).
        # TODO(synk): for large T switch to lax.fori_loop / a time grid axis
        # with scratch-carried (h, c) so code size and live ranges stay bounded.
        for k in range(T + 1):
            kx = min(k, T - 1)      # at k == T only the layer-2 half (bias b2) is used
            add = xw[kx * BT:(kx + 1) * BT, :]                    # (BT, 8H)
            if k == 0:
                gates = add                                       # h1 = h2 = 0
            else:
                hcat = jnp.concatenate([h1, h2], axis=1).astype(bf16)   # (BT, 2H)
                gates = add + jnp.dot(hcat, wrec, preferred_element_type=f32)
            # one full-width sigmoid for both layers' i, f, o gates
            s = _sigmoid(gates)                                   # (BT, 8H)
            if k >= 1:              # layer-2 @ time t = k - 1
                h2, c2 = cell(s[:, H4:], gates[:, H4 + 2 * H:H4 + 3 * H], c2)
                t = k - 1
                valid = (lenv > t).astype(f32)                    # pad_packed zeroing
                h2_scr[pl.ds(t * BT, BT), :] = h2 * valid
            if k < T:               # layer-1 @ time t = k
                h1, c1 = cell(s[:, :H4], gates[:, 2 * H:3 * H], c1)

        # ---- hoisted output stage: one (T*BT,H)@(H,V) GEMM, batched
        #      log_softmax, ONE lane-dense (T, BT, V) store. --------------------
        h_all = h2_scr[...]                                       # (T*BT, H) f32, masked
        logits = (jnp.dot(h_all.astype(bf16), wout_ref[...],
                          preferred_element_type=f32) + bout_ref[...])   # (T*BT, V)
        m = jnp.max(logits, axis=-1, keepdims=True)
        lse = m + jnp.log(jnp.sum(jnp.exp(logits - m), axis=-1, keepdims=True))
        out_ref[...] = (logits - lse).reshape(T, BT, V).astype(out_ref.dtype)

    return kernel


def two_layer_rnn_forward(input_seq, length, params, t_out):
    """input_seq: (B, T_in) int32 token ids; length: (B,) int32; t_out = max(length)+1 (static).

    NOTE: assumes t_out <= T_in (matches the PyTorch module's usage of
    pack_padded_sequence with lengths = length + 1).
    """
    emb, wih1, whh1, bih1, bhh1, wih2, whh2, bih2, bhh2, wout, bout = params
    B, _T_in = input_seq.shape
    E = emb.shape[1]
    H = whh1.shape[1]
    V = wout.shape[0]
    T = int(t_out)

    BT = 16                                    # bf16-packed sublane tile for the batch
    B_pad = ((B + BT - 1) // BT) * BT
    n_b = B_pad // BT

    f32 = jnp.float32
    bf16 = jnp.bfloat16

    # --- glue (plain JAX): embedding gather, eval-mode dropout = identity,
    #     batch padding to the sublane tile, time-major layout, weight prep ----
    x = emb[input_seq][:, :T, :]                                  # (B, T, E)
    x = jnp.pad(x, ((0, B_pad - B), (0, 0), (0, 0)))
    x_tm = jnp.transpose(x, (1, 0, 2)).astype(bf16)               # (T, B_pad, E)

    len_p1 = jnp.pad(length.astype(jnp.int32) + 1,
                     (0, B_pad - B)).reshape(B_pad, 1)            # (B_pad, 1) int32

    # Fused weights: x-projection padded to 8H columns (second half zero) so
    # the hoisted GEMM also bakes in b2; block recurrent weight (2H, 8H).
    wih1_pad = jnp.concatenate(
        [wih1.T, jnp.zeros((E, 4 * H), f32)], axis=1).astype(bf16)       # (E, 8H)
    bias_full = jnp.concatenate(
        [bih1 + bhh1, bih2 + bhh2]).reshape(1, 8 * H).astype(f32)        # (1, 8H)
    w_rec = jnp.concatenate(
        [jnp.concatenate([whh1.T, wih2.T], axis=1),
         jnp.concatenate([jnp.zeros((H, 4 * H), f32), whh2.T], axis=1)],
        axis=0).astype(bf16)                                             # (2H, 8H)
    w_out = wout.T.astype(bf16)                                          # (H, V)
    b_out = bout.reshape(1, V).astype(f32)                               # (1, V)

    kernel = make_two_layer_rnn_kernel(T, BT, H, V, E)

    # TODO(synk): for long T / large V additionally grid over time chunks
    # (scratch-carried h/c state) so the (T*B, V) logits slab and xw are tiled
    # and output writeback pipelines; at this size one VMEM-resident block per
    # batch tile is optimal.
    out = pl.pallas_call(
        kernel,
        out_shape=jax.ShapeDtypeStruct((T, B_pad, V), f32),
        grid=(n_b,),
        in_specs=[
            pl.BlockSpec((T, BT, E), lambda b: (0, b, 0)),        # x (time-major)
            pl.BlockSpec((BT, 1), lambda b: (b, 0)),              # length + 1
            pl.BlockSpec((E, 8 * H), lambda b: (0, 0)),           # [wih1 | 0]
            pl.BlockSpec((2 * H, 8 * H), lambda b: (0, 0)),       # W_rec
            pl.BlockSpec((1, 8 * H), lambda b: (0, 0)),           # [b1 | b2]
            pl.BlockSpec((H, V), lambda b: (0, 0)),               # W_out
            pl.BlockSpec((1, V), lambda b: (0, 0)),               # b_out
        ],
        out_specs=pl.BlockSpec((T, BT, V), lambda b: (0, b, 0)),
        scratch_shapes=[pltpu.VMEM((T * BT, H), f32)],            # h2 slab
        compiler_params=pltpu.CompilerParams(
            dimension_semantics=("parallel",),                    # batch tiles -> both v7x TCs
            vmem_limit_bytes=32 * 1024 * 1024),
    )(x_tm, len_p1, wih1_pad, w_rec, bias_full, w_out, b_out)

    out = out[:, :B, :]                                           # (T, B, V)
    return jnp.transpose(out, (1, 0, 2))                          # (B, T, V)


# ---------------- pure-JAX f32 reference (for correctness check) ----------------
def _ref_lstm_layer(x_tm, wih, whh, bih, bhh, H):
    B = x_tm.shape[1]

    def step(carry, x_t):
        h, c = carry
        gates = x_t @ wih.T + h @ whh.T + bih + bhh
        i = jax.nn.sigmoid(gates[:, :H])
        f = jax.nn.sigmoid(gates[:, H:2 * H])
        g = jnp.tanh(gates[:, 2 * H:3 * H])
        o = jax.nn.sigmoid(gates[:, 3 * H:])
        c = f * c + i * g
        h = o * jnp.tanh(c)
        return (h, c), h

    init = (jnp.zeros((B, H), jnp.float32), jnp.zeros((B, H), jnp.float32))
    _, hs = lax.scan(step, init, x_tm)
    return hs                                                     # (T, B, H)


def _reference_forward(input_seq, length, params, t_out):
    emb, wih1, whh1, bih1, bhh1, wih2, whh2, bih2, bhh2, wout, bout = params
    H = whh1.shape[1]
    x = emb[input_seq][:, :t_out, :].astype(jnp.float32)
    x_tm = jnp.transpose(x, (1, 0, 2))
    h1 = _ref_lstm_layer(x_tm, wih1, whh1, bih1, bhh1, H)
    h2 = _ref_lstm_layer(h1, wih2, whh2, bih2, bhh2, H)
    h2 = jnp.transpose(h2, (1, 0, 2))                             # (B, T, H)
    t_idx = jnp.arange(t_out)[None, :, None]
    mask = t_idx < (length.astype(jnp.int32) + 1)[:, None, None]
    h2 = jnp.where(mask, h2, 0.0)
    logits = h2 @ wout.T + bout
    return jax.nn.log_softmax(logits, axis=-1)


if __name__ == "__main__":
    # small config consistent with the module's __init__
    vocab_size, embed_size, hidden_size = 128, 32, 32
    time_step, dropout_rate = 8, 0.5
    bos_idx, eos_idx, pad_idx = 1, 2, 0
    B, T_in = 4, 8

    key = jax.random.PRNGKey(0)
    ks = jax.random.split(key, 12)
    kscale = 1.0 / np.sqrt(hidden_size)

    emb = jax.random.normal(ks[0], (vocab_size, embed_size), jnp.float32) * 0.1
    emb = emb.at[pad_idx].set(0.0)              # nn.Embedding padding_idx row = 0

    def uni(k, shape):
        return jax.random.uniform(k, shape, jnp.float32, -kscale, kscale)

    wih1 = uni(ks[1], (4 * hidden_size, embed_size))
    whh1 = uni(ks[2], (4 * hidden_size, hidden_size))
    bih1 = uni(ks[3], (4 * hidden_size,))
    bhh1 = uni(ks[4], (4 * hidden_size,))
    wih2 = uni(ks[5], (4 * hidden_size, hidden_size))
    whh2 = uni(ks[6], (4 * hidden_size, hidden_size))
    bih2 = uni(ks[7], (4 * hidden_size,))
    bhh2 = uni(ks[8], (4 * hidden_size,))
    wout = uni(ks[9], (vocab_size, hidden_size))
    bout = uni(ks[10], (vocab_size,))
    params = (emb, wih1, whh1, bih1, bhh1, wih2, whh2, bih2, bhh2, wout, bout)

    # deterministic inputs
    input_seq = jax.random.randint(ks[11], (B, T_in), 0, vocab_size, jnp.int32)
    length = jnp.array([6, 3, 7, 2], jnp.int32)          # max(length)+1 = 8 <= T_in
    t_out = int(np.max(np.asarray(length))) + 1

    logp = two_layer_rnn_forward(input_seq, length, params, t_out)
    logp = jax.block_until_ready(logp)

    ref = jax.block_until_ready(_reference_forward(input_seq, length, params, t_out))
    assert logp.shape == (B, t_out, vocab_size)
    # kernel uses bf16 MXU operands (f32 accumulate/elementwise); reference is pure f32
    np.testing.assert_allclose(np.asarray(logp), np.asarray(ref), rtol=1e-2, atol=1e-2)

    print("KERNEL_OK")
</pallas_src>

<mosaic_0001>
module attributes {stable_mosaic.version = 11 : i64} {
  func.func @kernel(%arg0: i32, %arg1: memref<8x16x32xbf16, #tpu.memory_space<vmem>>, %arg2: memref<16x1xi32, #tpu.memory_space<vmem>>, %arg3: memref<32x256xbf16, #tpu.memory_space<vmem>>, %arg4: memref<64x256xbf16, #tpu.memory_space<vmem>>, %arg5: memref<1x256xf32, #tpu.memory_space<vmem>>, %arg6: memref<32x128xbf16, #tpu.memory_space<vmem>>, %arg7: memref<1x128xf32, #tpu.memory_space<vmem>>, %arg8: memref<8x16x128xf32, #tpu.memory_space<vmem>>, %arg9: memref<128x32xf32, #tpu.memory_space<vmem>>) attributes {dimension_semantics = [#tpu.dimension_semantics<parallel>], iteration_bounds = array<i64: 1>, scalar_prefetch = 0 : i64, scratch_operands = 1 : i64, tpu.core_type = #tpu.core_type<tc>, window_params = [{transform_indices = @transform_0, window_bounds = array<i64: 8, 16, 32>}, {transform_indices = @transform_1, window_bounds = array<i64: 16, 1>}, {pipeline_mode = #tpu.pipeline_mode<synchronous>, transform_indices = @transform_2, window_bounds = array<i64: 32, 256>}, {pipeline_mode = #tpu.pipeline_mode<synchronous>, transform_indices = @transform_3, window_bounds = array<i64: 64, 256>}, {pipeline_mode = #tpu.pipeline_mode<synchronous>, transform_indices = @transform_4, window_bounds = array<i64: 1, 256>}, {pipeline_mode = #tpu.pipeline_mode<synchronous>, transform_indices = @transform_5, window_bounds = array<i64: 32, 128>}, {pipeline_mode = #tpu.pipeline_mode<synchronous>, transform_indices = @transform_6, window_bounds = array<i64: 1, 128>}, {transform_indices = @transform_7, window_bounds = array<i64: 8, 16, 128>}]} {
    %c0 = arith.constant 0 : index
    %c0_0 = arith.constant 0 : index
    %c0_1 = arith.constant 0 : index
    %0 = vector.load %arg1[%c0, %c0_0, %c0_1] : memref<8x16x32xbf16, #tpu.memory_space<vmem>>, vector<8x16x32xbf16>
    %1 = vector.shape_cast %0 : vector<8x16x32xbf16> to vector<128x32xbf16>
    %c0_2 = arith.constant 0 : index
    %c0_3 = arith.constant 0 : index
    %2 = vector.load %arg3[%c0_2, %c0_3] : memref<32x256xbf16, #tpu.memory_space<vmem>>, vector<32x256xbf16>
    %cst = arith.constant dense<0.000000e+00> : vector<128x256xf32>
    %3 = tpu.matmul %1, %2, %cst {dimension_numbers = #tpu.dot_dimension_numbers<[1], [0], [0], [1], [0, 0, 1, 1], [], []>} : vector<128x32xbf16>, vector<32x256xbf16>, vector<128x256xf32> -> vector<128x256xf32>
    %c0_4 = arith.constant 0 : index
    %c0_5 = arith.constant 0 : index
    %4 = vector.load %arg5[%c0_4, %c0_5] : memref<1x256xf32, #tpu.memory_space<vmem>>, vector<1x256xf32>
    %5 = vector.broadcast %4 : vector<1x256xf32> to vector<128x256xf32>
    %6 = arith.addf %3, %5 : vector<128x256xf32>
    %c0_6 = arith.constant 0 : index
    %c0_7 = arith.constant 0 : index
    %7 = vector.load %arg4[%c0_6, %c0_7] : memref<64x256xbf16, #tpu.memory_space<vmem>>, vector<64x256xbf16>
    %c0_8 = arith.constant 0 : index
    %c0_9 = arith.constant 0 : index
    %8 = vector.load %arg2[%c0_8, %c0_9] : memref<16x1xi32, #tpu.memory_space<vmem>>, vector<16x1xi32>
    %cst_10 = arith.constant 0.000000e+00 : f32
    %9 = vector.broadcast %cst_10 : f32 to vector<16x32xf32>
    %10 = vector.extract_strided_slice %6 {offsets = [0, 0], sizes = [16, 256], strides = [1, 1]} : vector<128x256xf32> to vector<16x256xf32>
    %cst_11 = arith.constant 5.000000e-01 : f32
    %11 = vector.broadcast %cst_11 : f32 to vector<16x256xf32>
    %12 = arith.mulf %11, %10 : vector<16x256xf32>
    %13 = math.tanh %12 : vector<16x256xf32>
    %cst_12 = arith.constant 5.000000e-01 : f32
    %14 = vector.broadcast %cst_12 : f32 to vector<16x256xf32>
    %15 = arith.mulf %14, %13 : vector<16x256xf32>
    %cst_13 = arith.constant 5.000000e-01 : f32
    %16 = vector.broadcast %cst_13 : f32 to vector<16x256xf32>
    %17 = arith.addf %15, %16 : vector<16x256xf32>
    %18 = vector.extract_strided_slice %17 {offsets = [0, 0], sizes = [16, 128], strides = [1, 1]} : vector<16x256xf32> to vector<16x128xf32>
    %19 = vector.extract_strided_slice %10 {offsets = [0, 64], sizes = [16, 32], strides = [1, 1]} : vector<16x256xf32> to vector<16x32xf32>
    %20 = vector.extract_strided_slice %18 {offsets = [0, 0], sizes = [16, 32], strides = [1, 1]} : vector<16x128xf32> to vector<16x32xf32>
    %21 = vector.extract_strided_slice %18 {offsets = [0, 32], sizes = [16, 32], strides = [1, 1]} : vector<16x128xf32> to vector<16x32xf32>
    %22 = vector.extract_strided_slice %18 {offsets = [0, 96], sizes = [16, 32], strides = [1, 1]} : vector<16x128xf32> to vector<16x32xf32>
    %23 = math.tanh %19 : vector<16x32xf32>
    %24 = arith.mulf %21, %9 : vector<16x32xf32>
    %25 = arith.mulf %20, %23 : vector<16x32xf32>
    %26 = arith.addf %24, %25 : vector<16x32xf32>
    %27 = math.tanh %26 : vector<16x32xf32>
    %28 = arith.mulf %22, %27 : vector<16x32xf32>
    %29 = vector.extract_strided_slice %6 {offsets = [16, 0], sizes = [16, 256], strides = [1, 1]} : vector<128x256xf32> to vector<16x256xf32>
    %30 = tpu.concatenate %28, %9 in 1 : vector<16x32xf32>, vector<16x32xf32> -> vector<16x64xf32>
    %31 = arith.truncf %30 : vector<16x64xf32> to vector<16x64xbf16>
    %cst_14 = arith.constant dense<0.000000e+00> : vector<16x256xf32>
    %32 = tpu.matmul %31, %7, %cst_14 {dimension_numbers = #tpu.dot_dimension_numbers<[1], [0], [0], [1], [0, 0, 1, 1], [], []>} : vector<16x64xbf16>, vector<64x256xbf16>, vector<16x256xf32> -> vector<16x256xf32>
    %33 = arith.addf %29, %32 : vector<16x256xf32>
    %cst_15 = arith.constant 5.000000e-01 : f32
    %34 = vector.broadcast %cst_15 : f32 to vector<16x256xf32>
    %35 = arith.mulf %34, %33 : vector<16x256xf32>
    %36 = math.tanh %35 : vector<16x256xf32>
    %cst_16 = arith.constant 5.000000e-01 : f32
    %37 = vector.broadcast %cst_16 : f32 to vector<16x256xf32>
    %38 = arith.mulf %37, %36 : vector<16x256xf32>
    %cst_17 = arith.constant 5.000000e-01 : f32
    %39 = vector.broadcast %cst_17 : f32 to vector<16x256xf32>
    %40 = arith.addf %38, %39 : vector<16x256xf32>
    %41 = vector.extract_strided_slice %40 {offsets = [0, 128], sizes = [16, 128], strides = [1, 1]} : vector<16x256xf32> to vector<16x128xf32>
    %42 = vector.extract_strided_slice %33 {offsets = [0, 192], sizes = [16, 32], strides = [1, 1]} : vector<16x256xf32> to vector<16x32xf32>
    %43 = vector.extract_strided_slice %41 {offsets = [0, 0], sizes = [16, 32], strides = [1, 1]} : vector<16x128xf32> to vector<16x32xf32>
    %44 = vector.extract_strided_slice %41 {offsets = [0, 32], sizes = [16, 32], strides = [1, 1]} : vector<16x128xf32> to vector<16x32xf32>
    %45 = vector.extract_strided_slice %41 {offsets = [0, 96], sizes = [16, 32], strides = [1, 1]} : vector<16x128xf32> to vector<16x32xf32>
    %46 = math.tanh %42 : vector<16x32xf32>
    %47 = arith.mulf %44, %9 : vector<16x32xf32>
    %48 = arith.mulf %43, %46 : vector<16x32xf32>
    %49 = arith.addf %47, %48 : vector<16x32xf32>
    %50 = math.tanh %49 : vector<16x32xf32>
    %51 = arith.mulf %45, %50 : vector<16x32xf32>
    %c0_i32 = arith.constant 0 : i32
    %52 = vector.broadcast %c0_i32 : i32 to vector<16x1xi32>
    %53 = arith.cmpi sgt, %8, %52 : vector<16x1xi32>
    %54 = arith.extui %53 : vector<16x1xi1> to vector<16x1xi32>
    %55 = arith.sitofp %54 : vector<16x1xi32> to vector<16x1xf32>
    %56 = vector.broadcast %55 : vector<16x1xf32> to vector<16x32xf32>
    %57 = arith.mulf %51, %56 : vector<16x32xf32>
    %c0_18 = arith.constant 0 : index
    %c0_19 = arith.constant 0 : index
    %58 = vector.load %arg9[%c0_18, %c0_19] : memref<128x32xf32, #tpu.memory_space<vmem>>, vector<16x32xf32>
    tpu.vector_store %arg9[%c0_18, %c0_19], %57 {strides = array<i32>} : memref<128x32xf32, #tpu.memory_space<vmem>>, vector<16x32xf32>,
    %59 = vector.extract_strided_slice %40 {offsets = [0, 0], sizes = [16, 128], strides = [1, 1]} : vector<16x256xf32> to vector<16x128xf32>
    %60 = vector.extract_strided_slice %33 {offsets = [0, 64], sizes = [16, 32], strides = [1, 1]} : vector<16x256xf32> to vector<16x32xf32>
    %61 = vector.extract_strided_slice %59 {offsets = [0, 0], sizes = [16, 32], strides = [1, 1]} : vector<16x128xf32> to vector<16x32xf32>
    %62 = vector.extract_strided_slice %59 {offsets = [0, 32], sizes = [16, 32], strides = [1, 1]} : vector<16x128xf32> to vector<16x32xf32>
    %63 = vector.extract_strided_slice %59 {offsets = [0, 96], sizes = [16, 32], strides = [1, 1]} : vector<16x128xf32> to vector<16x32xf32>
    %64 = math.tanh %60 : vector<16x32xf32>
    %65 = arith.mulf %62, %26 : vector<16x32xf32>
    %66 = arith.mulf %61, %64 : vector<16x32xf32>
    %67 = arith.addf %65, %66 : vector<16x32xf32>
    %68 = math.tanh %67 : vector<16x32xf32>
    %69 = arith.mulf %63, %68 : vector<16x32xf32>
    %70 = vector.extract_strided_slice %6 {offsets = [32, 0], sizes = [16, 256], strides = [1, 1]} : vector<128x256xf32> to vector<16x256xf32>
    %71 = tpu.concatenate %69, %51 in 1 : vector<16x32xf32>, vector<16x32xf32> -> vector<16x64xf32>
    %72 = arith.truncf %71 : vector<16x64xf32> to vector<16x64xbf16>
    %cst_20 = arith.constant dense<0.000000e+00> : vector<16x256xf32>
    %73 = tpu.matmul %72, %7, %cst_20 {dimension_numbers = #tpu.dot_dimension_numbers<[1], [0], [0], [1], [0, 0, 1, 1], [], []>} : vector<16x64xbf16>, vector<64x256xbf16>, vector<16x256xf32> -> vector<16x256xf32>
    %74 = arith.addf %70, %73 : vector<16x256xf32>
    %cst_21 = arith.constant 5.000000e-01 : f32
    %75 = vector.broadcast %cst_21 : f32 to vector<16x256xf32>
    %76 = arith.mulf %75, %74 : vector<16x256xf32>
    %77 = math.tanh %76 : vector<16x256xf32>
    %cst_22 = arith.constant 5.000000e-01 : f32
    %78 = vector.broadcast %cst_22 : f32 to vector<16x256xf32>
    %79 = arith.mulf %78, %77 : vector<16x256xf32>
    %cst_23 = arith.constant 5.000000e-01 : f32
    %80 = vector.broadcast %cst_23 : f32 to vector<16x256xf32>
    %81 = arith.addf %79, %80 : vector<16x256xf32>
    %82 = vector.extract_strided_slice %81 {offsets = [0, 128], sizes = [16, 128], strides = [1, 1]} : vector<16x256xf32> to vector<16x128xf32>
    %83 = vector.extract_strided_slice %74 {offsets = [0, 192], sizes = [16, 32], strides = [1, 1]} : vector<16x256xf32> to vector<16x32xf32>
    %84 = vector.extract_strided_slice %82 {offsets = [0, 0], sizes = [16, 32], strides = [1, 1]} : vector<16x128xf32> to vector<16x32xf32>
    %85 = vector.extract_strided_slice %82 {offsets = [0, 32], sizes = [16, 32], strides = [1, 1]} : vector<16x128xf32> to vector<16x32xf32>
    %86 = vector.extract_strided_slice %82 {offsets = [0, 96], sizes = [16, 32], strides = [1, 1]} : vector<16x128xf32> to vector<16x32xf32>
    %87 = math.tanh %83 : vector<16x32xf32>
    %88 = arith.mulf %85, %49 : vector<16x32xf32>
    %89 = arith.mulf %84, %87 : vector<16x32xf32>
    %90 = arith.addf %88, %89 : vector<16x32xf32>
    %91 = math.tanh %90 : vector<16x32xf32>
    %92 = arith.mulf %86, %91 : vector<16x32xf32>
    %c1_i32 = arith.constant 1 : i32
    %93 = vector.broadcast %c1_i32 : i32 to vector<16x1xi32>
    %94 = arith.cmpi sgt, %8, %93 : vector<16x1xi32>
    %95 = arith.extui %94 : vector<16x1xi1> to vector<16x1xi32>
    %96 = arith.sitofp %95 : vector<16x1xi32> to vector<16x1xf32>
    %97 = vector.broadcast %96 : vector<16x1xf32> to vector<16x32xf32>
    %98 = arith.mulf %92, %97 : vector<16x32xf32>
    %c16 = arith.constant 16 : index
    %c0_24 = arith.constant 0 : index
    %99 = vector.load %arg9[%c16, %c0_24] : memref<128x32xf32, #tpu.memory_space<vmem>>, vector<16x32xf32>
    tpu.vector_store %arg9[%c16, %c0_24], %98 {strides = array<i32>} : memref<128x32xf32, #tpu.memory_space<vmem>>, vector<16x32xf32>,
    %100 = vector.extract_strided_slice %81 {offsets = [0, 0], sizes = [16, 128], strides = [1, 1]} : vector<16x256xf32> to vector<16x128xf32>
    %101 = vector.extract_strided_slice %74 {offsets = [0, 64], sizes = [16, 32], strides = [1, 1]} : vector<16x256xf32> to vector<16x32xf32>
    %102 = vector.extract_strided_slice %100 {offsets = [0, 0], sizes = [16, 32], strides = [1, 1]} : vector<16x128xf32> to vector<16x32xf32>
    %103 = vector.extract_strided_slice %100 {offsets = [0, 32], sizes = [16, 32], strides = [1, 1]} : vector<16x128xf32> to vector<16x32xf32>
    %104 = vector.extract_strided_slice %100 {offsets = [0, 96], sizes = [16, 32], strides = [1, 1]} : vector<16x128xf32> to vector<16x32xf32>
    %105 = math.tanh %101 : vector<16x32xf32>
    %106 = arith.mulf %103, %67 : vector<16x32xf32>
    %107 = arith.mulf %102, %105 : vector<16x32xf32>
    %108 = arith.addf %106, %107 : vector<16x32xf32>
    %109 = math.tanh %108 : vector<16x32xf32>
    %110 = arith.mulf %104, %109 : vector<16x32xf32>
    %111 = vector.extract_strided_slice %6 {offsets = [48, 0], sizes = [16, 256], strides = [1, 1]} : vector<128x256xf32> to vector<16x256xf32>
    %112 = tpu.concatenate %110, %92 in 1 : vector<16x32xf32>, vector<16x32xf32> -> vector<16x64xf32>
    %113 = arith.truncf %112 : vector<16x64xf32> to vector<16x64xbf16>
    %cst_25 = arith.constant dense<0.000000e+00> : vector<16x256xf32>
    %114 = tpu.matmul %113, %7, %cst_25 {dimension_numbers = #tpu.dot_dimension_numbers<[1], [0], [0], [1], [0, 0, 1, 1], [], []>} : vector<16x64xbf16>, vector<64x256xbf16>, vector<16x256xf32> -> vector<16x256xf32>
    %115 = arith.addf %111, %114 : vector<16x256xf32>
    %cst_26 = arith.constant 5.000000e-01 : f32
    %116 = vector.broadcast %cst_26 : f32 to vector<16x256xf32>
    %117 = arith.mulf %116, %115 : vector<16x256xf32>
    %118 = math.tanh %117 : vector<16x256xf32>
    %cst_27 = arith.constant 5.000000e-01 : f32
    %119 = vector.broadcast %cst_27 : f32 to vector<16x256xf32>
    %120 = arith.mulf %119, %118 : vector<16x256xf32>
    %cst_28 = arith.constant 5.000000e-01 : f32
    %121 = vector.broadcast %cst_28 : f32 to vector<16x256xf32>
    %122 = arith.addf %120, %121 : vector<16x256xf32>
    %123 = vector.extract_strided_slice %122 {offsets = [0, 128], sizes = [16, 128], strides = [1, 1]} : vector<16x256xf32> to vector<16x128xf32>
    %124 = vector.extract_strided_slice %115 {offsets = [0, 192], sizes = [16, 32], strides = [1, 1]} : vector<16x256xf32> to vector<16x32xf32>
    %125 = vector.extract_strided_slice %123 {offsets = [0, 0], sizes = [16, 32], strides = [1, 1]} : vector<16x128xf32> to vector<16x32xf32>
    %126 = vector.extract_strided_slice %123 {offsets = [0, 32], sizes = [16, 32], strides = [1, 1]} : vector<16x128xf32> to vector<16x32xf32>
    %127 = vector.extract_strided_slice %123 {offsets = [0, 96], sizes = [16, 32], strides = [1, 1]} : vector<16x128xf32> to vector<16x32xf32>
    %128 = math.tanh %124 : vector<16x32xf32>
    %129 = arith.mulf %126, %90 : vector<16x32xf32>
    %130 = arith.mulf %125, %128 : vector<16x32xf32>
    %131 = arith.addf %129, %130 : vector<16x32xf32>
    %132 = math.tanh %131 : vector<16x32xf32>
    %133 = arith.mulf %127, %132 : vector<16x32xf32>
    %c2_i32 = arith.constant 2 : i32
    %134 = vector.broadcast %c2_i32 : i32 to vector<16x1xi32>
    %135 = arith.cmpi sgt, %8, %134 : vector<16x1xi32>
    %136 = arith.extui %135 : vector<16x1xi1> to vector<16x1xi32>
    %137 = arith.sitofp %136 : vector<16x1xi32> to vector<16x1xf32>
    %138 = vector.broadcast %137 : vector<16x1xf32> to vector<16x32xf32>
    %139 = arith.mulf %133, %138 : vector<16x32xf32>
    %c32 = arith.constant 32 : index
    %c0_29 = arith.constant 0 : index
    %140 = vector.load %arg9[%c32, %c0_29] : memref<128x32xf32, #tpu.memory_space<vmem>>, vector<16x32xf32>
    tpu.vector_store %arg9[%c32, %c0_29], %139 {strides = array<i32>} : memref<128x32xf32, #tpu.memory_space<vmem>>, vector<16x32xf32>,
    %141 = vector.extract_strided_slice %122 {offsets = [0, 0], sizes = [16, 128], strides = [1, 1]} : vector<16x256xf32> to vector<16x128xf32>
    %142 = vector.extract_strided_slice %115 {offsets = [0, 64], sizes = [16, 32], strides = [1, 1]} : vector<16x256xf32> to vector<16x32xf32>
    %143 = vector.extract_strided_slice %141 {offsets = [0, 0], sizes = [16, 32], strides = [1, 1]} : vector<16x128xf32> to vector<16x32xf32>
    %144 = vector.extract_strided_slice %141 {offsets = [0, 32], sizes = [16, 32], strides = [1, 1]} : vector<16x128xf32> to vector<16x32xf32>
    %145 = vector.extract_strided_slice %141 {offsets = [0, 96], sizes = [16, 32], strides = [1, 1]} : vector<16x128xf32> to vector<16x32xf32>
    %146 = math.tanh %142 : vector<16x32xf32>
    %147 = arith.mulf %144, %108 : vector<16x32xf32>
    %148 = arith.mulf %143, %146 : vector<16x32xf32>
    %149 = arith.addf %147, %148 : vector<16x32xf32>
    %150 = math.tanh %149 : vector<16x32xf32>
    %151 = arith.mulf %145, %150 : vector<16x32xf32>
    %152 = vector.extract_strided_slice %6 {offsets = [64, 0], sizes = [16, 256], strides = [1, 1]} : vector<128x256xf32> to vector<16x256xf32>
    %153 = tpu.concatenate %151, %133 in 1 : vector<16x32xf32>, vector<16x32xf32> -> vector<16x64xf32>
    %154 = arith.truncf %153 : vector<16x64xf32> to vector<16x64xbf16>
    %cst_30 = arith.constant dense<0.000000e+00> : vector<16x256xf32>
    %155 = tpu.matmul %154, %7, %cst_30 {dimension_numbers = #tpu.dot_dimension_numbers<[1], [0], [0], [1], [0, 0, 1, 1], [], []>} : vector<16x64xbf16>, vector<64x256xbf16>, vector<16x256xf32> -> vector<16x256xf32>
    %156 = arith.addf %152, %155 : vector<16x256xf32>
    %cst_31 = arith.constant 5.000000e-01 : f32
    %157 = vector.broadcast %cst_31 : f32 to vector<16x256xf32>
    %158 = arith.mulf %157, %156 : vector<16x256xf32>
    %159 = math.tanh %158 : vector<16x256xf32>
    %cst_32 = arith.constant 5.000000e-01 : f32
    %160 = vector.broadcast %cst_32 : f32 to vector<16x256xf32>
    %161 = arith.mulf %160, %159 : vector<16x256xf32>
    %cst_33 = arith.constant 5.000000e-01 : f32
    %162 = vector.broadcast %cst_33 : f32 to vector<16x256xf32>
    %163 = arith.addf %161, %162 : vector<16x256xf32>
    %164 = vector.extract_strided_slice %163 {offsets = [0, 128], sizes = [16, 128], strides = [1, 1]} : vector<16x256xf32> to vector<16x128xf32>
    %165 = vector.extract_strided_slice %156 {offsets = [0, 192], sizes = [16, 32], strides = [1, 1]} : vector<16x256xf32> to vector<16x32xf32>
    %166 = vector.extract_strided_slice %164 {offsets = [0, 0], sizes = [16, 32], strides = [1, 1]} : vector<16x128xf32> to vector<16x32xf32>
    %167 = vector.extract_strided_slice %164 {offsets = [0, 32], sizes = [16, 32], strides = [1, 1]} : vector<16x128xf32> to vector<16x32xf32>
    %168 = vector.extract_strided_slice %164 {offsets = [0, 96], sizes = [16, 32], strides = [1, 1]} : vector<16x128xf32> to vector<16x32xf32>
    %169 = math.tanh %165 : vector<16x32xf32>
    %170 = arith.mulf %167, %131 : vector<16x32xf32>
    %171 = arith.mulf %166, %169 : vector<16x32xf32>
    %172 = arith.addf %170, %171 : vector<16x32xf32>
    %173 = math.tanh %172 : vector<16x32xf32>
    %174 = arith.mulf %168, %173 : vector<16x32xf32>
    %c3_i32 = arith.constant 3 : i32
    %175 = vector.broadcast %c3_i32 : i32 to vector<16x1xi32>
    %176 = arith.cmpi sgt, %8, %175 : vector<16x1xi32>
    %177 = arith.extui %176 : vector<16x1xi1> to vector<16x1xi32>
    %178 = arith.sitofp %177 : vector<16x1xi32> to vector<16x1xf32>
    %179 = vector.broadcast %178 : vector<16x1xf32> to vector<16x32xf32>
    %180 = arith.mulf %174, %179 : vector<16x32xf32>
    %c48 = arith.constant 48 : index
    %c0_34 = arith.constant 0 : index
    %181 = vector.load %arg9[%c48, %c0_34] : memref<128x32xf32, #tpu.memory_space<vmem>>, vector<16x32xf32>
    tpu.vector_store %arg9[%c48, %c0_34], %180 {strides = array<i32>} : memref<128x32xf32, #tpu.memory_space<vmem>>, vector<16x32xf32>,
    %182 = vector.extract_strided_slice %163 {offsets = [0, 0], sizes = [16, 128], strides = [1, 1]} : vector<16x256xf32> to vector<16x128xf32>
    %183 = vector.extract_strided_slice %156 {offsets = [0, 64], sizes = [16, 32], strides = [1, 1]} : vector<16x256xf32> to vector<16x32xf32>
    %184 = vector.extract_strided_slice %182 {offsets = [0, 0], sizes = [16, 32], strides = [1, 1]} : vector<16x128xf32> to vector<16x32xf32>
    %185 = vector.extract_strided_slice %182 {offsets = [0, 32], sizes = [16, 32], strides = [1, 1]} : vector<16x128xf32> to vector<16x32xf32>
    %186 = vector.extract_strided_slice %182 {offsets = [0, 96], sizes = [16, 32], strides = [1, 1]} : vector<16x128xf32> to vector<16x32xf32>
    %187 = math.tanh %183 : vector<16x32xf32>
    %188 = arith.mulf %185, %149 : vector<16x32xf32>
    %189 = arith.mulf %184, %187 : vector<16x32xf32>
    %190 = arith.addf %188, %189 : vector<16x32xf32>
    %191 = math.tanh %190 : vector<16x32xf32>
    %192 = arith.mulf %186, %191 : vector<16x32xf32>
    %193 = vector.extract_strided_slice %6 {offsets = [80, 0], sizes = [16, 256], strides = [1, 1]} : vector<128x256xf32> to vector<16x256xf32>
    %194 = tpu.concatenate %192, %174 in 1 : vector<16x32xf32>, vector<16x32xf32> -> vector<16x64xf32>
    %195 = arith.truncf %194 : vector<16x64xf32> to vector<16x64xbf16>
    %cst_35 = arith.constant dense<0.000000e+00> : vector<16x256xf32>
    %196 = tpu.matmul %195, %7, %cst_35 {dimension_numbers = #tpu.dot_dimension_numbers<[1], [0], [0], [1], [0, 0, 1, 1], [], []>} : vector<16x64xbf16>, vector<64x256xbf16>, vector<16x256xf32> -> vector<16x256xf32>
    %197 = arith.addf %193, %196 : vector<16x256xf32>
    %cst_36 = arith.constant 5.000000e-01 : f32
    %198 = vector.broadcast %cst_36 : f32 to vector<16x256xf32>
    %199 = arith.mulf %198, %197 : vector<16x256xf32>
    %200 = math.tanh %199 : vector<16x256xf32>
    %cst_37 = arith.constant 5.000000e-01 : f32
    %201 = vector.broadcast %cst_37 : f32 to vector<16x256xf32>
    %202 = arith.mulf %201, %200 : vector<16x256xf32>
    %cst_38 = arith.constant 5.000000e-01 : f32
    %203 = vector.broadcast %cst_38 : f32 to vector<16x256xf32>
    %204 = arith.addf %202, %203 : vector<16x256xf32>
    %205 = vector.extract_strided_slice %204 {offsets = [0, 128], sizes = [16, 128], strides = [1, 1]} : vector<16x256xf32> to vector<16x128xf32>
    %206 = vector.extract_strided_slice %197 {offsets = [0, 192], sizes = [16, 32], strides = [1, 1]} : vector<16x256xf32> to vector<16x32xf32>
    %207 = vector.extract_strided_slice %205 {offsets = [0, 0], sizes = [16, 32], strides = [1, 1]} : vector<16x128xf32> to vector<16x32xf32>
    %208 = vector.extract_strided_slice %205 {offsets = [0, 32], sizes = [16, 32], strides = [1, 1]} : vector<16x128xf32> to vector<16x32xf32>
    %209 = vector.extract_strided_slice %205 {offsets = [0, 96], sizes = [16, 32], strides = [1, 1]} : vector<16x128xf32> to vector<16x32xf32>
    %210 = math.tanh %206 : vector<16x32xf32>
    %211 = arith.mulf %208, %172 : vector<16x32xf32>
    %212 = arith.mulf %207, %210 : vector<16x32xf32>
    %213 = arith.addf %211, %212 : vector<16x32xf32>
    %214 = math.tanh %213 : vector<16x32xf32>
    %215 = arith.mulf %209, %214 : vector<16x32xf32>
    %c4_i32 = arith.constant 4 : i32
    %216 = vector.broadcast %c4_i32 : i32 to vector<16x1xi32>
    %217 = arith.cmpi sgt, %8, %216 : vector<16x1xi32>
    %218 = arith.extui %217 : vector<16x1xi1> to vector<16x1xi32>
    %219 = arith.sitofp %218 : vector<16x1xi32> to vector<16x1xf32>
    %220 = vector.broadcast %219 : vector<16x1xf32> to vector<16x32xf32>
    %221 = arith.mulf %215, %220 : vector<16x32xf32>
    %c64 = arith.constant 64 : index
    %c0_39 = arith.constant 0 : index
    %222 = vector.load %arg9[%c64, %c0_39] : memref<128x32xf32, #tpu.memory_space<vmem>>, vector<16x32xf32>
    tpu.vector_store %arg9[%c64, %c0_39], %221 {strides = array<i32>} : memref<128x32xf32, #tpu.memory_space<vmem>>, vector<16x32xf32>,
    %223 = vector.extract_strided_slice %204 {offsets = [0, 0], sizes = [16, 128], strides = [1, 1]} : vector<16x256xf32> to vector<16x128xf32>
    %224 = vector.extract_strided_slice %197 {offsets = [0, 64], sizes = [16, 32], strides = [1, 1]} : vector<16x256xf32> to vector<16x32xf32>
    %225 = vector.extract_strided_slice %223 {offsets = [0, 0], sizes = [16, 32], strides = [1, 1]} : vector<16x128xf32> to vector<16x32xf32>
    %226 = vector.extract_strided_slice %223 {offsets = [0, 32], sizes = [16, 32], strides = [1, 1]} : vector<16x128xf32> to vector<16x32xf32>
    %227 = vector.extract_strided_slice %223 {offsets = [0, 96], sizes = [16, 32], strides = [1, 1]} : vector<16x128xf32> to vector<16x32xf32>
    %228 = math.tanh %224 : vector<16x32xf32>
    %229 = arith.mulf %226, %190 : vector<16x32xf32>
    %230 = arith.mulf %225, %228 : vector<16x32xf32>
    %231 = arith.addf %229, %230 : vector<16x32xf32>
    %232 = math.tanh %231 : vector<16x32xf32>
    %233 = arith.mulf %227, %232 : vector<16x32xf32>
    %234 = vector.extract_strided_slice %6 {offsets = [96, 0], sizes = [16, 256], strides = [1, 1]} : vector<128x256xf32> to vector<16x256xf32>
    %235 = tpu.concatenate %233, %215 in 1 : vector<16x32xf32>, vector<16x32xf32> -> vector<16x64xf32>
    %236 = arith.truncf %235 : vector<16x64xf32> to vector<16x64xbf16>
    %cst_40 = arith.constant dense<0.000000e+00> : vector<16x256xf32>
    %237 = tpu.matmul %236, %7, %cst_40 {dimension_numbers = #tpu.dot_dimension_numbers<[1], [0], [0], [1], [0, 0, 1, 1], [], []>} : vector<16x64xbf16>, vector<64x256xbf16>, vector<16x256xf32> -> vector<16x256xf32>
    %238 = arith.addf %234, %237 : vector<16x256xf32>
    %cst_41 = arith.constant 5.000000e-01 : f32
    %239 = vector.broadcast %cst_41 : f32 to vector<16x256xf32>
    %240 = arith.mulf %239, %238 : vector<16x256xf32>
    %241 = math.tanh %240 : vector<16x256xf32>
    %cst_42 = arith.constant 5.000000e-01 : f32
    %242 = vector.broadcast %cst_42 : f32 to vector<16x256xf32>
    %243 = arith.mulf %242, %241 : vector<16x256xf32>
    %cst_43 = arith.constant 5.000000e-01 : f32
    %244 = vector.broadcast %cst_43 : f32 to vector<16x256xf32>
    %245 = arith.addf %243, %244 : vector<16x256xf32>
    %246 = vector.extract_strided_slice %245 {offsets = [0, 128], sizes = [16, 128], strides = [1, 1]} : vector<16x256xf32> to vector<16x128xf32>
    %247 = vector.extract_strided_slice %238 {offsets = [0, 192], sizes = [16, 32], strides = [1, 1]} : vector<16x256xf32> to vector<16x32xf32>
    %248 = vector.extract_strided_slice %246 {offsets = [0, 0], sizes = [16, 32], strides = [1, 1]} : vector<16x128xf32> to vector<16x32xf32>
    %249 = vector.extract_strided_slice %246 {offsets = [0, 32], sizes = [16, 32], strides = [1, 1]} : vector<16x128xf32> to vector<16x32xf32>
    %250 = vector.extract_strided_slice %246 {offsets = [0, 96], sizes = [16, 32], strides = [1, 1]} : vector<16x128xf32> to vector<16x32xf32>
    %251 = math.tanh %247 : vector<16x32xf32>
    %252 = arith.mulf %249, %213 : vector<16x32xf32>
    %253 = arith.mulf %248, %251 : vector<16x32xf32>
    %254 = arith.addf %252, %253 : vector<16x32xf32>
    %255 = math.tanh %254 : vector<16x32xf32>
    %256 = arith.mulf %250, %255 : vector<16x32xf32>
    %c5_i32 = arith.constant 5 : i32
    %257 = vector.broadcast %c5_i32 : i32 to vector<16x1xi32>
    %258 = arith.cmpi sgt, %8, %257 : vector<16x1xi32>
    %259 = arith.extui %258 : vector<16x1xi1> to vector<16x1xi32>
    %260 = arith.sitofp %259 : vector<16x1xi32> to vector<16x1xf32>
    %261 = vector.broadcast %260 : vector<16x1xf32> to vector<16x32xf32>
    %262 = arith.mulf %256, %261 : vector<16x32xf32>
    %c80 = arith.constant 80 : index
    %c0_44 = arith.constant 0 : index
    %263 = vector.load %arg9[%c80, %c0_44] : memref<128x32xf32, #tpu.memory_space<vmem>>, vector<16x32xf32>
    tpu.vector_store %arg9[%c80, %c0_44], %262 {strides = array<i32>} : memref<128x32xf32, #tpu.memory_space<vmem>>, vector<16x32xf32>,
    %264 = vector.extract_strided_slice %245 {offsets = [0, 0], sizes = [16, 128], strides = [1, 1]} : vector<16x256xf32> to vector<16x128xf32>
    %265 = vector.extract_strided_slice %238 {offsets = [0, 64], sizes = [16, 32], strides = [1, 1]} : vector<16x256xf32> to vector<16x32xf32>
    %266 = vector.extract_strided_slice %264 {offsets = [0, 0], sizes = [16, 32], strides = [1, 1]} : vector<16x128xf32> to vector<16x32xf32>
    %267 = vector.extract_strided_slice %264 {offsets = [0, 32], sizes = [16, 32], strides = [1, 1]} : vector<16x128xf32> to vector<16x32xf32>
    %268 = vector.extract_strided_slice %264 {offsets = [0, 96], sizes = [16, 32], strides = [1, 1]} : vector<16x128xf32> to vector<16x32xf32>
    %269 = math.tanh %265 : vector<16x32xf32>
    %270 = arith.mulf %267, %231 : vector<16x32xf32>
    %271 = arith.mulf %266, %269 : vector<16x32xf32>
    %272 = arith.addf %270, %271 : vector<16x32xf32>
    %273 = math.tanh %272 : vector<16x32xf32>
    %274 = arith.mulf %268, %273 : vector<16x32xf32>
    %275 = vector.extract_strided_slice %6 {offsets = [112, 0], sizes = [16, 256], strides = [1, 1]} : vector<128x256xf32> to vector<16x256xf32>
    %276 = tpu.concatenate %274, %256 in 1 : vector<16x32xf32>, vector<16x32xf32> -> vector<16x64xf32>
    %277 = arith.truncf %276 : vector<16x64xf32> to vector<16x64xbf16>
    %cst_45 = arith.constant dense<0.000000e+00> : vector<16x256xf32>
    %278 = tpu.matmul %277, %7, %cst_45 {dimension_numbers = #tpu.dot_dimension_numbers<[1], [0], [0], [1], [0, 0, 1, 1], [], []>} : vector<16x64xbf16>, vector<64x256xbf16>, vector<16x256xf32> -> vector<16x256xf32>
    %279 = arith.addf %275, %278 : vector<16x256xf32>
    %cst_46 = arith.constant 5.000000e-01 : f32
    %280 = vector.broadcast %cst_46 : f32 to vector<16x256xf32>
    %281 = arith.mulf %280, %279 : vector<16x256xf32>
    %282 = math.tanh %281 : vector<16x256xf32>
    %cst_47 = arith.constant 5.000000e-01 : f32
    %283 = vector.broadcast %cst_47 : f32 to vector<16x256xf32>
    %284 = arith.mulf %283, %282 : vector<16x256xf32>
    %cst_48 = arith.constant 5.000000e-01 : f32
    %285 = vector.broadcast %cst_48 : f32 to vector<16x256xf32>
    %286 = arith.addf %284, %285 : vector<16x256xf32>
    %287 = vector.extract_strided_slice %286 {offsets = [0, 128], sizes = [16, 128], strides = [1, 1]} : vector<16x256xf32> to vector<16x128xf32>
    %288 = vector.extract_strided_slice %279 {offsets = [0, 192], sizes = [16, 32], strides = [1, 1]} : vector<16x256xf32> to vector<16x32xf32>
    %289 = vector.extract_strided_slice %287 {offsets = [0, 0], sizes = [16, 32], strides = [1, 1]} : vector<16x128xf32> to vector<16x32xf32>
    %290 = vector.extract_strided_slice %287 {offsets = [0, 32], sizes = [16, 32], strides = [1, 1]} : vector<16x128xf32> to vector<16x32xf32>
    %291 = vector.extract_strided_slice %287 {offsets = [0, 96], sizes = [16, 32], strides = [1, 1]} : vector<16x128xf32> to vector<16x32xf32>
    %292 = math.tanh %288 : vector<16x32xf32>
    %293 = arith.mulf %290, %254 : vector<16x32xf32>
    %294 = arith.mulf %289, %292 : vector<16x32xf32>
    %295 = arith.addf %293, %294 : vector<16x32xf32>
    %296 = math.tanh %295 : vector<16x32xf32>
    %297 = arith.mulf %291, %296 : vector<16x32xf32>
    %c6_i32 = arith.constant 6 : i32
    %298 = vector.broadcast %c6_i32 : i32 to vector<16x1xi32>
    %299 = arith.cmpi sgt, %8, %298 : vector<16x1xi32>
    %300 = arith.extui %299 : vector<16x1xi1> to vector<16x1xi32>
    %301 = arith.sitofp %300 : vector<16x1xi32> to vector<16x1xf32>
    %302 = vector.broadcast %301 : vector<16x1xf32> to vector<16x32xf32>
    %303 = arith.mulf %297, %302 : vector<16x32xf32>
    %c96 = arith.constant 96 : index
    %c0_49 = arith.constant 0 : index
    %304 = vector.load %arg9[%c96, %c0_49] : memref<128x32xf32, #tpu.memory_space<vmem>>, vector<16x32xf32>
    tpu.vector_store %arg9[%c96, %c0_49], %303 {strides = array<i32>} : memref<128x32xf32, #tpu.memory_space<vmem>>, vector<16x32xf32>,
    %305 = vector.extract_strided_slice %286 {offsets = [0, 0], sizes = [16, 128], strides = [1, 1]} : vector<16x256xf32> to vector<16x128xf32>
    %306 = vector.extract_strided_slice %279 {offsets = [0, 64], sizes = [16, 32], strides = [1, 1]} : vector<16x256xf32> to vector<16x32xf32>
    %307 = vector.extract_strided_slice %305 {offsets = [0, 0], sizes = [16, 32], strides = [1, 1]} : vector<16x128xf32> to vector<16x32xf32>
    %308 = vector.extract_strided_slice %305 {offsets = [0, 32], sizes = [16, 32], strides = [1, 1]} : vector<16x128xf32> to vector<16x32xf32>
    %309 = vector.extract_strided_slice %305 {offsets = [0, 96], sizes = [16, 32], strides = [1, 1]} : vector<16x128xf32> to vector<16x32xf32>
    %310 = math.tanh %306 : vector<16x32xf32>
    %311 = arith.mulf %308, %272 : vector<16x32xf32>
    %312 = arith.mulf %307, %310 : vector<16x32xf32>
    %313 = arith.addf %311, %312 : vector<16x32xf32>
    %314 = math.tanh %313 : vector<16x32xf32>
    %315 = arith.mulf %309, %314 : vector<16x32xf32>
    %316 = vector.extract_strided_slice %6 {offsets = [112, 0], sizes = [16, 256], strides = [1, 1]} : vector<128x256xf32> to vector<16x256xf32>
    %317 = tpu.concatenate %315, %297 in 1 : vector<16x32xf32>, vector<16x32xf32> -> vector<16x64xf32>
    %318 = arith.truncf %317 : vector<16x64xf32> to vector<16x64xbf16>
    %cst_50 = arith.constant dense<0.000000e+00> : vector<16x256xf32>
    %319 = tpu.matmul %318, %7, %cst_50 {dimension_numbers = #tpu.dot_dimension_numbers<[1], [0], [0], [1], [0, 0, 1, 1], [], []>} : vector<16x64xbf16>, vector<64x256xbf16>, vector<16x256xf32> -> vector<16x256xf32>
    %320 = arith.addf %316, %319 : vector<16x256xf32>
    %cst_51 = arith.constant 5.000000e-01 : f32
    %321 = vector.broadcast %cst_51 : f32 to vector<16x256xf32>
    %322 = arith.mulf %321, %320 : vector<16x256xf32>
    %323 = math.tanh %322 : vector<16x256xf32>
    %cst_52 = arith.constant 5.000000e-01 : f32
    %324 = vector.broadcast %cst_52 : f32 to vector<16x256xf32>
    %325 = arith.mulf %324, %323 : vector<16x256xf32>
    %cst_53 = arith.constant 5.000000e-01 : f32
    %326 = vector.broadcast %cst_53 : f32 to vector<16x256xf32>
    %327 = arith.addf %325, %326 : vector<16x256xf32>
    %328 = vector.extract_strided_slice %327 {offsets = [0, 128], sizes = [16, 128], strides = [1, 1]} : vector<16x256xf32> to vector<16x128xf32>
    %329 = vector.extract_strided_slice %320 {offsets = [0, 192], sizes = [16, 32], strides = [1, 1]} : vector<16x256xf32> to vector<16x32xf32>
    %330 = vector.extract_strided_slice %328 {offsets = [0, 0], sizes = [16, 32], strides = [1, 1]} : vector<16x128xf32> to vector<16x32xf32>
    %331 = vector.extract_strided_slice %328 {offsets = [0, 32], sizes = [16, 32], strides = [1, 1]} : vector<16x128xf32> to vector<16x32xf32>
    %332 = vector.extract_strided_slice %328 {offsets = [0, 96], sizes = [16, 32], strides = [1, 1]} : vector<16x128xf32> to vector<16x32xf32>
    %333 = math.tanh %329 : vector<16x32xf32>
    %334 = arith.mulf %331, %295 : vector<16x32xf32>
    %335 = arith.mulf %330, %333 : vector<16x32xf32>
    %336 = arith.addf %334, %335 : vector<16x32xf32>
    %337 = math.tanh %336 : vector<16x32xf32>
    %338 = arith.mulf %332, %337 : vector<16x32xf32>
    %c7_i32 = arith.constant 7 : i32
    %339 = vector.broadcast %c7_i32 : i32 to vector<16x1xi32>
    %340 = arith.cmpi sgt, %8, %339 : vector<16x1xi32>
    %341 = arith.extui %340 : vector<16x1xi1> to vector<16x1xi32>
    %342 = arith.sitofp %341 : vector<16x1xi32> to vector<16x1xf32>
    %343 = vector.broadcast %342 : vector<16x1xf32> to vector<16x32xf32>
    %344 = arith.mulf %338, %343 : vector<16x32xf32>
    %c112 = arith.constant 112 : index
    %c0_54 = arith.constant 0 : index
    %345 = vector.load %arg9[%c112, %c0_54] : memref<128x32xf32, #tpu.memory_space<vmem>>, vector<16x32xf32>
    tpu.vector_store %arg9[%c112, %c0_54], %344 {strides = array<i32>} : memref<128x32xf32, #tpu.memory_space<vmem>>, vector<16x32xf32>,
    %c0_55 = arith.constant 0 : index
    %c0_56 = arith.constant 0 : index
    %346 = vector.load %arg9[%c0_55, %c0_56] : memref<128x32xf32, #tpu.memory_space<vmem>>, vector<128x32xf32>
    %347 = arith.truncf %346 : vector<128x32xf32> to vector<128x32xbf16>
    %c0_57 = arith.constant 0 : index
    %c0_58 = arith.constant 0 : index
    %348 = vector.load %arg6[%c0_57, %c0_58] : memref<32x128xbf16, #tpu.memory_space<vmem>>, vector<32x128xbf16>
    %cst_59 = arith.constant dense<0.000000e+00> : vector<128x128xf32>
    %349 = tpu.matmul %347, %348, %cst_59 {dimension_numbers = #tpu.dot_dimension_numbers<[1], [0], [0], [1], [0, 0, 1, 1], [], []>} : vector<128x32xbf16>, vector<32x128xbf16>, vector<128x128xf32> -> vector<128x128xf32>
    %c0_60 = arith.constant 0 : index
    %c0_61 = arith.constant 0 : index
    %350 = vector.load %arg7[%c0_60, %c0_61] : memref<1x128xf32, #tpu.memory_space<vmem>>, vector<1x128xf32>
    %351 = vector.broadcast %350 : vector<1x128xf32> to vector<128x128xf32>
    %352 = arith.addf %349, %351 : vector<128x128xf32>
    %cst_62 = arith.constant dense<0xFF800000> : vector<128xf32>
    %353 = vector.multi_reduction <maximumf>, %352, %cst_62 [1] : vector<128x128xf32> to vector<128xf32>
    %354 = vector.shape_cast %353 : vector<128xf32> to vector<128x1xf32>
    %355 = vector.broadcast %354 : vector<128x1xf32> to vector<128x128xf32>
    %356 = arith.subf %352, %355 : vector<128x128xf32>
    %357 = math.exp %356 : vector<128x128xf32>
    %cst_63 = arith.constant dense<0.000000e+00> : vector<128xf32>
    %358 = vector.multi_reduction <add>, %357, %cst_63 [1] : vector<128x128xf32> to vector<128xf32>
    %359 = vector.shape_cast %358 : vector<128xf32> to vector<128x1xf32>
    %360 = math.log %359 : vector<128x1xf32>
    %361 = arith.addf %354, %360 : vector<128x1xf32>
    %362 = vector.broadcast %361 : vector<128x1xf32> to vector<128x128xf32>
    %363 = arith.subf %352, %362 : vector<128x128xf32>
    %364 = vector.shape_cast %363 : vector<128x128xf32> to vector<8x16x128xf32>
    %c0_64 = arith.constant 0 : index
    %c0_65 = arith.constant 0 : index
    %c0_66 = arith.constant 0 : index
    %365 = vector.load %arg8[%c0_64, %c0_65, %c0_66] : memref<8x16x128xf32, #tpu.memory_space<vmem>>, vector<8x16x128xf32>
    tpu.vector_store %arg8[%c0_64, %c0_65, %c0_66], %364 {strides = array<i32>} : memref<8x16x128xf32, #tpu.memory_space<vmem>>, vector<8x16x128xf32>,
    return
  }
  func.func @transform_0(%arg0: i32) -> (i32, i32, i32) {
    %c0_i32 = arith.constant 0 : i32
    %c0_i32_0 = arith.constant 0 : i32
    %c0_i32_1 = arith.constant 0 : i32
    return %c0_i32, %arg0, %c0_i32_0 : i32, i32, i32
  }
  func.func @transform_1(%arg0: i32) -> (i32, i32) {
    %c0_i32 = arith.constant 0 : i32
    %c0_i32_0 = arith.constant 0 : i32
    return %arg0, %c0_i32 : i32, i32
  }
  func.func @transform_2(%arg0: i32) -> (i32, i32) {
    %c0_i32 = arith.constant 0 : i32
    %c0_i32_0 = arith.constant 0 : i32
    %c0_i32_1 = arith.constant 0 : i32
    return %c0_i32, %c0_i32_0 : i32, i32
  }
  func.func @transform_3(%arg0: i32) -> (i32, i32) {
    %c0_i32 = arith.constant 0 : i32
    %c0_i32_0 = arith.constant 0 : i32
    %c0_i32_1 = arith.constant 0 : i32
    return %c0_i32, %c0_i32_0 : i32, i32
  }
  func.func @transform_4(%arg0: i32) -> (i32, i32) {
    %c0_i32 = arith.constant 0 : i32
    %c0_i32_0 = arith.constant 0 : i32
    %c0_i32_1 = arith.constant 0 : i32
    return %c0_i32, %c0_i32_0 : i32, i32
  }
  func.func @transform_5(%arg0: i32) -> (i32, i32) {
    %c0_i32 = arith.constant 0 : i32
    %c0_i32_0 = arith.constant 0 : i32
    %c0_i32_1 = arith.constant 0 : i32
    return %c0_i32, %c0_i32_0 : i32, i32
  }
  func.func @transform_6(%arg0: i32) -> (i32, i32) {
    %c0_i32 = arith.constant 0 : i32
    %c0_i32_0 = arith.constant 0 : i32
    %c0_i32_1 = arith.constant 0 : i32
    return %c0_i32, %c0_i32_0 : i32, i32
  }
  func.func @transform_7(%arg0: i32) -> (i32, i32, i32) {
    %c0_i32 = arith.constant 0 : i32
    %c0_i32_0 = arith.constant 0 : i32
    %c0_i32_1 = arith.constant 0 : i32
    return %c0_i32, %arg0, %c0_i32_0 : i32, i32, i32
  }
}

</mosaic_0001>

<bundles_post_ra>
// kernel: tpu_custom_call.1
= control target key start
LH: loop header
LB: loop body
LE: loop exit
PB: predicated region body
PF: predicated region fallthrough
CT: control target
= control target key end

     0   :  { %12 = vsyncpa [#allocation4], 0  ;;  %s3573_s0 = inlined_call_operand.hbm [shape: bf16[8,16,32], index: 0, kind: input, shape index: {}]   ;;  %s3574_s1 = inlined_call_operand.vmem [shape: s32[16,1], index: 1, kind: input, shape index: {}]   ;;  %s3575_s2 = inlined_call_operand.hbm [shape: bf16[32,256], index: 2, kind: input, shape index: {}]   ;;  %s3576_s3 = inlined_call_operand.hbm [shape: bf16[64,256], index: 3, kind: input, shape index: {}]   ;;  %s3577_s4 = inlined_call_operand.vmem [shape: f32[1,256], index: 4, kind: input, shape index: {}]   ;;  %s3578_s5 = inlined_call_operand.vmem [shape: bf16[32,128], index: 5, kind: input, shape index: {}]   ;;  %s3579_s6 = inlined_call_operand.vmem [shape: f32[1,128], index: 6, kind: input, shape index: {}]   ;;  %s3580_s7 = inlined_call_operand.hbm [shape: f32[8,16,128], index: 7, kind: output, shape index: {}]  }
   0x1   :  { %13 = vsyncpa [#allocation7], 0 }
   0x2   :  { %14 = vsyncpa [#allocation5], 0  ;;  %s2796_s24 = smov [#allocation6]  }
   0x3   :  { %s34_s25 = sshll.u32 %s2796_s24, 4  ;;  %s35_s25 = int_to_ptr.vmem [resolvable:$true] %s34_s25 }
   0x4   :  { %s2718_s26 = scalar_lea.vmem %s35_s25, 512  ;;  %p2723_p1 = scmp.lt.s32.totalorder %s35_s25, %s35_s25 }
   0x5   :  { %p2719_p0 = scmp.ne.s32.totalorder %s35_s25, %s2718_s26  ;;  %p2724_p2 = scmp.lt.s32.totalorder %s2718_s26, %s2718_s26 }
   0x7   :  { %p2725_p3 = por %p2724_p2, %p2723_p1 }
   0x9   :  { %p2726_p4 = pnand %p2725_p3, %p2719_p0 }
   0xb   :  { %2729 = shalt.err (!%p2726_p4)
}
   0xc   :  { %s2797_s27 = smov 128   ;;  %s2798_s28 = smov 8  }
   0xd   :  { %40 = dma.hbm_to_vmem [thread:$0]  %s3575_s2, 512, %s35_s25, [#allocation7], %s2797_s27, %s2797_s27, %s2798_s28  }
   0xe   :  { %s2799_s8 = smov [#allocation3]  }
   0xf   :  { %s20_s9 = sshll.u32 %s2799_s8, 4  ;;  %s21_s9 = int_to_ptr.vmem [resolvable:$true] %s20_s9 }
  0x10   :  { %s2738_s10 = scalar_lea.vmem %s21_s9, 1024  ;;  %p2743_p6 = scmp.lt.s32.totalorder %s21_s9, %s21_s9 }
  0x11   :  { %p2739_p5 = scmp.ne.s32.totalorder %s21_s9, %s2738_s10  ;;  %p2744_p7 = scmp.lt.s32.totalorder %s2738_s10, %s2738_s10 }
  0x13   :  { %p2745_p8 = por %p2744_p7, %p2743_p6 }
  0x15   :  { %p2746_p9 = pnand %p2745_p8, %p2739_p5 }
  0x17   :  { %2749 = shalt.err (!%p2746_p9)
}
  0x18   :  { %s2800_s11 = smov 64   ;;  %s2801_s12 = smov 4  }
  0x19   :  { %26 = dma.hbm_to_vmem [thread:$0]  %s3573_s0, 1024, %s21_s9, [#allocation4], %s2800_s11, %s2800_s11, %s2801_s12  }
  0x1a   :  { %s2802_s15 = smov [#allocation8]  }
  0x1b   :  { %s46_s2 = sshll.u32 %s2802_s15, 4  ;;  %s47_s2 = int_to_ptr.vmem [resolvable:$true] %s46_s2 }
  0x1c   :  { %s2758_s16 = scalar_lea.vmem %s47_s2, 1024  ;;  %p2763_p11 = scmp.lt.s32.totalorder %s47_s2, %s47_s2 }
  0x1d   :  { %p2759_p10 = scmp.ne.s32.totalorder %s47_s2, %s2758_s16  ;;  %p2764_p12 = scmp.lt.s32.totalorder %s2758_s16, %s2758_s16 }
  0x1f   :  { %p2765_p13 = por %p2764_p12, %p2763_p11 }
  0x21   :  { %p2766_p0 = pnand %p2765_p13, %p2759_p10 }
  0x23   :  { %2769 = shalt.err (!%p2766_p0)
}
  0x24   :  { %52 = dma.hbm_to_vmem [thread:$0]  %s3576_s3, 1024, %s47_s2, [#allocation7], %s2797_s27, %s2797_s27, %s2798_s28  }
  0x25   :  { %2790 = dma.done.wait [#allocation4], 1024  }
  0x26   :  { %2791 = vsyncadd [#allocation4], 4294966272 }
  0x27   :  { %2792 = dma.done.wait [#allocation7], 1536  }
  0x28   :  { %2793 = vsyncadd [#allocation7], 4294965760  ;;  %v2803_v0 = vmov 0   ;;  %v2419_v1 = vld [vmem:[#allocation6 + $0x14] ss:$8 sps:$4 sm:$0xff]   ;;  %v2425_v5 = vld [vmem:[#allocation3] sm:$0xff]   ;;  %v91_v6 = vlaneseq }
  0x29   :  { %218 = vmatprep.mubr.bf16.mxu0 %v2803_v0  ;;  %276 = vmatprep.mubr.bf16.mxu1 %v2803_v0  ;;  %v2421_v2 = vld [vmem:[#allocation6 + $0x10] ss:$8 sps:$4 sm:$0xff]   ;;  %v2422_v3 = vld [vmem:[#allocation6 + $0x4] ss:$8 sps:$4 sm:$0xff]   ;;  %v2424_v4 = vld [vmem:[#allocation6] ss:$8 sps:$4 sm:$0xff]  }
  0x2a   :  { %2377 = vset.pattern.permute.xlu1 %v2803_v0  ;;  %2383 = vset.pattern.permute.xlu0 %v2803_v0  ;;  %vm161_vm0 = vcmask 261120   ;;  %v2870_v7 = vshrl.u32 %v91_v6, 7  ;;  %v2876_v9 = vld [vmem:[%s3577_s4] sm:$0x3]  ;;  %s2804_s4 = smov 32   ;;  %v2426_v37 = vld [vmem:[#allocation3 + $0x30] sm:$0xff]  }
  0x2b   :  { %198 = vmatprep.subr.bf16.mxu0 %v2419_v1  ;;  %2287 = vmatprep.subr.bf16.mxu1 %v2419_v1  ;;  %v2893_v38 = vld [vmem:[#allocation8 + $0x34] ss:$8 sps:$4 sm:$0xff]   ;;  %v2895_v39 = vld [vmem:[#allocation8 + $0x30] ss:$8 sps:$4 sm:$0xff]   ;;  %v2897_v40 = vld [vmem:[#allocation8 + $0x24] ss:$8 sps:$4 sm:$0xff]  }
  0x2c   :  { %199 = vmatpush1.bf16.msra.mxu0 %v2421_v2  ;;  %2289 = vmatpush1.bf16.msra.mxu1 %v2421_v2  ;;  %v93_v8 = vsub.s32 0, %v2870_v7  ;;  %v2436_v41 = vld [vmem:[#allocation3 + $0x8] sm:$0xff]   ;;  %v2906_v44 = vld [vmem:[#allocation8 + $0x14] ss:$8 sps:$4 sm:$0xff]   ;;  %v2913_v46 = vld [vmem:[#allocation8 + $0x10] ss:$8 sps:$4 sm:$0xff]  }
  0x2d   :  { %200 = vmatprep.subr.bf16.mxu0 %v2422_v3  ;;  %2288 = vmatprep.subr.bf16.mxu1 %v2422_v3  ;;  %v2903_v42 = vld [vmem:[#allocation8 + $0x20] ss:$8 sps:$4 sm:$0xff]   ;;  %v2430_v45 = vld [vmem:[#allocation3 + $0x38] sm:$0xff]   ;;  %v2925_v48 = vld [vmem:[#allocation8 + $0x4] ss:$8 sps:$4 sm:$0xff]   ;;  %vm402_vm1 = vcmask 523264  }
  0x2e   :  { %v2879_v10 = vrot.slane %v2876_v9, %v93_v8  ;;  %v2927_v49 = vld [vmem:[#allocation8] ss:$8 sps:$4 sm:$0xff]   ;;  %v97_v8 = vsub.s32 1, %v2870_v7 }
  0x30   :  { %201 = vmatpush1.bf16.msra.mxu0 %v2424_v4  ;;  %2290 = vmatpush1.bf16.msra.mxu1 %v2424_v4 }
  0x31   :  { %414 = vmatprep.subr.bf16.mxu1 %v2893_v38  ;;  %1154 = vmatprep.subr.bf16.mxu0 %v2893_v38 }
  0x33   :  { %2206 = vmatmul.mubr.msk.bf16.vlgmr.msra.gmra.mxu0 %vm161_vm0, %v2425_v5  ;;  %2212 = vmatmul.mubr.msk.bf16.vlgmr.msra.gmra.mxu1 %vm161_vm0, %v2426_v37 }
  0x34   :  { %226 = vmatprep.mubr.bf16.mxu0 %v2803_v0  ;;  %415 = vmatpush1.bf16.msra.mxu1 %v2895_v39 }
  0x35   :  { %286 = vmatprep.mubr.bf16.mxu1 %v2803_v0  ;;  %416 = vmatprep.subr.bf16.mxu1 %v2897_v40 }
  0x36   :  { %1155 = vmatpush1.bf16.msra.mxu0 %v2895_v39 }
  0x37   :  { %1156 = vmatprep.subr.bf16.mxu0 %v2897_v40 }
  0x38   :  { %417 = vmatpush1.bf16.msra.mxu1 %v2903_v42 }
  0x39   :  { %418 = vmatprep.subr.bf16.mxu1 %v2906_v44 }
  0x3a   :  { %1157 = vmatpush1.bf16.msra.mxu0 %v2903_v42 }
  0x3b   :  { %2207 = vmatmul.mubr.msk.bf16.gmra.mxu0 %vm161_vm0, %v2436_v41  ;;  %2213 = vmatmul.mubr.msk.bf16.gmra.mxu1 %vm161_vm0, %v2430_v45 }
  0x3c   :  { %236 = vmatprep.mubr.bf16.mxu0 %v2803_v0  ;;  %419 = vmatpush1.bf16.msra.mxu1 %v2913_v46 }
  0x3d   :  { %438 = vmatprep.mubr.bf16.mxu1 %v2803_v0  ;;  %1158 = vmatprep.subr.bf16.mxu0 %v2906_v44 }
  0x3e   :  { %1159 = vmatpush1.bf16.msra.mxu0 %v2913_v46  ;;  %420 = vmatprep.subr.bf16.mxu1 %v2925_v48 }
  0x3f   :  { %1160 = vmatprep.subr.bf16.mxu0 %v2925_v48 }
  0x40   :  { %421 = vmatpush1.bf16.msra.mxu1 %v2927_v49 }
  0x41   :  { %599 = vmatprep.subr.bf16.mxu1 %v2893_v38 }
  0x42   :  { %1161 = vmatpush1.bf16.msra.mxu0 %v2927_v49 }
  0x43   :  { %1524 = vmatprep.subr.bf16.mxu0 %v2893_v38 }
  0xf3   :  { %v220_v11 = vpop.f32.mrf.mxu0  ;;  %v2948_v61 = vpop.f32.mrf.mxu1 }
  0xf4   :  { %v221_v12 = vadd.f32 %v220_v11, %v2879_v10 }
  0xf5   :  { %v222_v13 = vpop.f32.mrf.mxu0  ;;  %v2950_v62 = vpop.f32.mrf.mxu1 }
  0xf6   :  { %2447 = vtanh.f32 %v221_v12  ;;  %v307_v19 = vmul.f32 0.5, %v221_v12  ;;  %v2966_v13 = vrot.slane %v2876_v9, %v97_v8 }
  0xf7   :  { %v223_v14 = vpop.f32.mrf.mxu0  ;;  %v2952_v63 = vpop.f32.mrf.mxu1 }
  0xf8   :  { %v224_v15 = vadd.f32 %v223_v14, %v2879_v10 }
  0xf9   :  { %v225_v16 = vpop.f32.mrf.mxu0  ;;  %v2954_v1 = vpop.f32.mrf.mxu1 }
  0xfa   :  { %2449 = vtanh.f32 %v224_v15  ;;  %v308_v20 = vmul.f32 0.5, %v224_v15 }
  0xfb   :  { %2451 = vtanh.f32 %v307_v19  ;;  %v2956_v2 = vpop.f32.mrf.mxu1  ;;  %v228_v4 = vpop.f32.mrf.mxu0 }
  0xfc   :  { %2453 = vtanh.f32 %v308_v20  ;;  %v229_v15 = vadd.f32 %v228_v4, %v2879_v10 }
  0xfd   :  { %v2958_v3 = vpop.f32.mrf.mxu1  ;;  %v230_v6 = vpop.f32.mrf.mxu0 }
  0xfe   :  { %v231_v16 = vadd.f32 %v230_v6, %v2966_v13 }
  0xff   :  { %v2960_v5 = vpop.f32.mrf.mxu1  ;;  %v232_v12 = vpop.f32.mrf.mxu0 }
 0x101   :  { %v2963_v11 = vpop.f32.mrf.mxu1 }
 0x103   :  { %v2448_v17 = vpop.eup %2447 }
 0x104   :  { %321 = vrot.lane.b32.xlu0 %v2448_v17, %s2800_s11  ;;  %v234_v17 = vpop.f32.mrf.mxu0 }
 0x107   :  { %v2450_v18 = vpop.eup %2449 }
 0x108   :  { %323 = vrot.lane.b32.xlu0 %v2450_v18, %s2800_s11  ;;  %v2452_v21 = vpop.eup %2451 }
 0x109   :  { %v311_v22 = vmul.f32 0.5, %v2452_v21  ;;  %v2454_v23 = vpop.eup %2453  ;;  %v235_v21 = vadd.f32 %v234_v17, %v2966_v13 }
 0x10a   :  { %v312_v24 = vmul.f32 0.5, %v2454_v23 }
 0x10b   :  { %v313_v25 = vadd.f32 0.5, %v311_v22 }
 0x10c   :  { %v314_v28 = vadd.f32 0.5, %v312_v24  ;;  %v233_v24 = vadd.f32 %v232_v12, %v2879_v10 }
 0x10d   :  { %v317_v31 = vmul.f32 0.0, %v313_v25 }
 0x10e   :  { %v318_v34 = vmul.f32 0.0, %v314_v28 }
 0x176   :  { %v322_v26 = vpop.permute.xlu0 %321 }
 0x177   :  { %v327_v27 = vmul.f32 %v322_v26, %v313_v25 }
 0x179   :  { %331 = vrot.lane.b32.xlu1 %v327_v27, %s2804_s4 }
 0x17a   :  { %v324_v29 = vpop.permute.xlu0 %323 }
 0x17b   :  { %v328_v30 = vmul.f32 %v324_v29, %v314_v28 }
 0x17d   :  { %333 = vrot.lane.b32.xlu1 %v328_v30, %s2804_s4 }
 0x1eb   :  { %v332_v32 = vpop.permute.xlu1 %331 }
 0x1ec   :  { %v2887_v33 = vadd.f32 %v332_v32, %v317_v31 }
 0x1ee   :  { %2455 = vtanh.f32 %v2887_v33 }
 0x1ef   :  { %v334_v35 = vpop.permute.xlu1 %333 }
 0x1f0   :  { %v2890_v36 = vadd.f32 %v334_v35, %v318_v34 }
 0x1f2   :  { %2457 = vtanh.f32 %v2890_v36 }
 0x1fb   :  { %v2456_v43 = vpop.eup %2455 }
 0x1fc   :  { %343 = vrot.lane.b32.xlu0 %v2456_v43, %s2800_s11 }
 0x1ff   :  { %v2458_v47 = vpop.eup %2457 }
 0x200   :  { %345 = vrot.lane.b32.xlu1 %v2458_v47, %s2800_s11 }
 0x26e   :  { %v344_v50 = vpop.permute.xlu0 %343 }
 0x26f   :  { %v349_v52 = vmul.f32 %v344_v50, %v313_v25 }
 0x272   :  { %v346_v51 = vpop.permute.xlu1 %345 }
 0x273   :  { %v350_v53 = vmul.f32 %v346_v51, %v314_v28 }
 0x275   :  { %v2302_v54 = vpack.i.bf16 %v350_v53, %v349_v52 }
 0x277   :  { %2303 = vrot.lane.b32.xlu0 %v2302_v54, %s2804_s4 }
 0x2e9   :  { %v2304_v55 = vpop.permute.xlu0 %2303 }
 0x2ea   :  { %v2306_v56 = vunpack.i.h.bf16 %v2304_v55  ;;  %v2305_v57 = vunpack.i.l.bf16 %v2304_v55 }
 0x2ec   :  { %v360_v58 = vsel %vm161_vm0, %v2306_v56, 0.0  ;;  %v359_v59 = vsel %vm161_vm0, %v2305_v57, 0.0 }
 0x2ed   :  { %v361_v60 = vpack.c.bf16 %v360_v58, %v359_v59 }
 0x2ef   :  { %2222 = vmatmul.mubr.msk.bf16.vlgmr.msra.gmra.mxu1 %vm402_vm1, %v361_v60 }
 0x2f0   :  { %600 = vmatpush1.bf16.msra.mxu1 %v2895_v39  ;;  %623 = vmatprep.mubr.bf16.mxu1 %v2803_v0 }
 0x2f1   :  { %601 = vmatprep.subr.bf16.mxu1 %v2897_v40 }
 0x2f4   :  { %602 = vmatpush1.bf16.msra.mxu1 %v2903_v42 }
 0x2f5   :  { %603 = vmatprep.subr.bf16.mxu1 %v2906_v44 }
 0x2f8   :  { %604 = vmatpush1.bf16.msra.mxu1 %v2913_v46 }
 0x2f9   :  { %605 = vmatprep.subr.bf16.mxu1 %v2925_v48 }
 0x2fc   :  { %606 = vmatpush1.bf16.msra.mxu1 %v2927_v49 }
 0x2fd   :  { %784 = vmatprep.subr.bf16.mxu1 %v2893_v38 }
 0x3af   :  { %v440_v14 = vpop.f32.mrf.mxu1 }
 0x3b0   :  { %v449_v22 = vadd.f32 %v440_v14, %v229_v15 }
 0x3b1   :  { %v442_v18 = vpop.f32.mrf.mxu1 }
 0x3b2   :  { %v450_v19 = vadd.f32 %v442_v18, %v231_v16  ;;  %v453_v30 = vmul.f32 0.5, %v449_v22 }
 0x3b3   :  { %v444_v20 = vpop.f32.mrf.mxu1 }
 0x3b4   :  { %2459 = vtanh.f32 %v450_v19  ;;  %v451_v9 = vadd.f32 %v444_v20, %v233_v24  ;;  %v454_v29 = vmul.f32 0.5, %v450_v19 }
 0x3b5   :  { %v446_v7 = vpop.f32.mrf.mxu1  ;;  %2461 = vtanh.f32 %v449_v22 }
 0x3b6   :  { %v452_v23 = vadd.f32 %v446_v7, %v235_v21  ;;  %v455_v32 = vmul.f32 0.5, %v451_v9 }
 0x3b8   :  { %2463 = vtanh.f32 %v452_v23  ;;  %v456_v31 = vmul.f32 0.5, %v452_v23 }
 0x3b9   :  { %2465 = vtanh.f32 %v451_v9 }
 0x3ba   :  { %2467 = vtanh.f32 %v454_v29 }
 0x3bb   :  { %2469 = vtanh.f32 %v453_v30 }
 0x3bc   :  { %2471 = vtanh.f32 %v456_v31 }
 0x3bd   :  { %2473 = vtanh.f32 %v455_v32 }
 0x3c1   :  { %v2460_v25 = vpop.eup %2459 }
 0x3c2   :  { %475 = vrot.lane.b32.xlu1 %v2460_v25, %s2800_s11  ;;  %v2462_v26 = vpop.eup %2461 }
 0x3c5   :  { %v2464_v27 = vpop.eup %2463 }
 0x3c6   :  { %539 = vrot.lane.b32.xlu1 %v2462_v26, %s2800_s11  ;;  %477 = vrot.lane.b32.xlu0 %v2464_v27, %s2800_s11  ;;  %v2466_v28 = vpop.eup %2465 }
 0x3c7   :  { %v2468_v34 = vpop.eup %2467 }
 0x3c8   :  { %v2470_v35 = vpop.eup %2469  ;;  %v462_v37 = vmul.f32 0.5, %v2468_v34 }
 0x3c9   :  { %v2472_v41 = vpop.eup %2471  ;;  %v461_v43 = vmul.f32 0.5, %v2470_v35 }
 0x3ca   :  { %541 = vrot.lane.b32.xlu0 %v2466_v28, %s2800_s11  ;;  %v464_v45 = vmul.f32 0.5, %v2472_v41  ;;  %v466_v47 = vadd.f32 0.5, %v462_v37  ;;  %v2474_v50 = vpop.eup %2473 }
 0x3cb   :  { %v463_v53 = vmul.f32 0.5, %v2474_v50  ;;  %v465_v54 = vadd.f32 0.5, %v461_v43 }
 0x3cc   :  { %v468_v55 = vadd.f32 0.5, %v464_v45  ;;  %v471_v8 = vmul.f32 0.0, %v466_v47 }
 0x3cd   :  { %v467_v60 = vadd.f32 0.5, %v463_v53  ;;  %v535_v15 = vmul.f32 %v465_v54, %v2887_v33 }
 0x3ce   :  { %v472_v16 = vmul.f32 0.0, %v468_v55 }
 0x3cf   :  { %v536_v21 = vmul.f32 %v467_v60, %v2890_v36  ;;  %v2441_v36 = vld [vmem:[#allocation3 + $0x10] sm:$0xff]  }
 0x3d0   :  { %2208 = vmatmul.mubr.msk.bf16.gmra.mxu0 %vm161_vm0, %v2441_v36 }
 0x3d1   :  { %246 = vmatprep.mubr.bf16.mxu0 %v2803_v0 }
 0x434   :  { %v476_v51 = vpop.permute.xlu1 %475 }
 0x435   :  { %v481_v52 = vmul.f32 %v476_v51, %v466_v47 }
 0x437   :  { %485 = vrot.lane.b32.xlu1 %v481_v52, %s2804_s4 }
 0x438   :  { %v540_v56 = vpop.permute.xlu1 %539  ;;  %v478_v57 = vpop.permute.xlu0 %477 }
 0x439   :  { %v545_v58 = vmul.f32 %v540_v56, %v465_v54  ;;  %v482_v59 = vmul.f32 %v478_v57, %v468_v55 }
 0x43b   :  { %549 = vrot.lane.b32.xlu1 %v545_v58, %s2804_s4  ;;  %487 = vrot.lane.b32.xlu0 %v482_v59, %s2804_s4 }
 0x43c   :  { %v542_v4 = vpop.permute.xlu0 %541 }
 0x43d   :  { %v546_v6 = vmul.f32 %v542_v4, %v467_v60 }
 0x43f   :  { %551 = vrot.lane.b32.xlu0 %v546_v6, %s2804_s4 }
 0x4a9   :  { %v486_v12 = vpop.permute.xlu1 %485 }
 0x4aa   :  { %v2980_v14 = vadd.f32 %v486_v12, %v471_v8 }
 0x4ac   :  { %2475 = vtanh.f32 %v2980_v14 }
 0x4ad   :  { %v550_v17 = vpop.permute.xlu1 %549  ;;  %v488_v18 = vpop.permute.xlu0 %487 }
 0x4ae   :  { %v2984_v19 = vadd.f32 %v550_v17, %v535_v15  ;;  %v2986_v20 = vadd.f32 %v488_v18, %v472_v16 }
 0x4b0   :  { %2477 = vtanh.f32 %v2984_v19 }
 0x4b1   :  { %2479 = vtanh.f32 %v2986_v20  ;;  %v552_v22 = vpop.permute.xlu0 %551 }
 0x4b2   :  { %v2991_v7 = vadd.f32 %v552_v22, %v536_v21 }
 0x4b4   :  { %2481 = vtanh.f32 %v2991_v7 }
 0x4b9   :  { %v2476_v23 = vpop.eup %2475 }
 0x4ba   :  { %497 = vrot.lane.b32.xlu1 %v2476_v23, %s2800_s11 }
 0x4bd   :  { %v2478_v33 = vpop.eup %2477 }
 0x4be   :  { %v2480_v24 = vpop.eup %2479  ;;  %561 = vrot.lane.b32.xlu1 %v2478_v33, %s2800_s11 }
 0x4bf   :  { %499 = vrot.lane.b32.xlu0 %v2480_v24, %s2800_s11 }
 0x4c1   :  { %v2482_v9 = vpop.eup %2481 }
 0x4c3   :  { %563 = vrot.lane.b32.xlu0 %v2482_v9, %s2800_s11 }
 0x52c   :  { %v498_v25 = vpop.permute.xlu1 %497 }
 0x52d   :  { %v3000_v27 = vmul.f32 %v498_v25, %v466_v47 }
 0x530   :  { %v562_v29 = vpop.permute.xlu1 %561 }
 0x531   :  { %v500_v26 = vpop.permute.xlu0 %499  ;;  %v567_v32 = vmul.f32 %v562_v29, %v465_v54  ;;  %v238_v54 = vpop.f32.mrf.mxu0 }
 0x532   :  { %v3002_v28 = vmul.f32 %v500_v26, %v468_v55  ;;  %v239_v58 = vadd.f32 %v238_v54, %v2879_v10 }
 0x533   :  { %v240_v55 = vpop.f32.mrf.mxu0 }
 0x534   :  { %v2312_v30 = vpack.i.bf16 %v3002_v28, %v3000_v27  ;;  %v241_v59 = vadd.f32 %v240_v55, %v2966_v13 }
 0x535   :  { %v564_v31 = vpop.permute.xlu0 %563  ;;  %v242_v56 = vpop.f32.mrf.mxu0 }
 0x536   :  { %v568_v34 = vmul.f32 %v564_v31, %v467_v60  ;;  %2313 = vrot.lane.b32.xlu0 %v2312_v30, %s2800_s11  ;;  %v243_v18 = vadd.f32 %v242_v56, %v2879_v10 }
 0x537   :  { %v244_v60 = vpop.f32.mrf.mxu0 }
 0x538   :  { %v2307_v35 = vpack.i.bf16 %v568_v34, %v567_v32  ;;  %v245_v12 = vadd.f32 %v244_v60, %v2966_v13 }
 0x53a   :  { %2308 = vrot.lane.b32.xlu1 %v2307_v35, %s2804_s4 }
 0x5a8   :  { %v2314_v37 = vpop.permute.xlu0 %2313 }
 0x5a9   :  { %v2316_v43 = vunpack.i.h.bf16 %v2314_v37  ;;  %v2315_v45 = vunpack.i.l.bf16 %v2314_v37 }
 0x5ac   :  { %v2309_v41 = vpop.permute.xlu1 %2308 }
 0x5ad   :  { %v2311_v47 = vunpack.i.h.bf16 %v2309_v41  ;;  %v2310_v50 = vunpack.i.l.bf16 %v2309_v41 }
 0x5af   :  { %v585_v51 = vsel %vm161_vm0, %v2310_v50, %v2315_v45  ;;  %v586_v52 = vsel %vm161_vm0, %v2311_v47, %v2316_v43 }
 0x5b0   :  { %v587_v53 = vpack.c.bf16 %v586_v52, %v585_v51 }
 0x5b2   :  { %2225 = vmatmul.mubr.msk.bf16.vlgmr.msra.gmra.mxu1 %vm402_vm1, %v587_v53 }
 0x5b3   :  { %785 = vmatpush1.bf16.msra.mxu1 %v2895_v39  ;;  %808 = vmatprep.mubr.bf16.mxu1 %v2803_v0 }
 0x5b4   :  { %786 = vmatprep.subr.bf16.mxu1 %v2897_v40 }
 0x5b7   :  { %787 = vmatpush1.bf16.msra.mxu1 %v2903_v42 }
 0x5b8   :  { %788 = vmatprep.subr.bf16.mxu1 %v2906_v44 }
 0x5bb   :  { %789 = vmatpush1.bf16.msra.mxu1 %v2913_v46 }
 0x5bc   :  { %790 = vmatprep.subr.bf16.mxu1 %v2925_v48 }
 0x5bf   :  { %791 = vmatpush1.bf16.msra.mxu1 %v2927_v49 }
 0x5c0   :  { %969 = vmatprep.subr.bf16.mxu1 %v2893_v38 }
 0x672   :  { %v625_v57 = vpop.f32.mrf.mxu1 }
 0x673   :  { %v634_v15 = vadd.f32 %v625_v57, %v239_v58 }
 0x674   :  { %v627_v4 = vpop.f32.mrf.mxu1 }
 0x675   :  { %v635_v6 = vadd.f32 %v627_v4, %v241_v59  ;;  %v638_v36 = vmul.f32 0.5, %v634_v15 }
 0x676   :  { %v629_v8 = vpop.f32.mrf.mxu1 }
 0x677   :  { %2483 = vtanh.f32 %v635_v6  ;;  %v636_v21 = vadd.f32 %v629_v8, %v243_v18  ;;  %v639_v9 = vmul.f32 0.5, %v635_v6 }
 0x678   :  { %v631_v16 = vpop.f32.mrf.mxu1  ;;  %2485 = vtanh.f32 %v634_v15 }
 0x679   :  { %v637_v17 = vadd.f32 %v631_v16, %v245_v12  ;;  %v640_v26 = vmul.f32 0.5, %v636_v21 }
 0x67b   :  { %2487 = vtanh.f32 %v637_v17  ;;  %v641_v25 = vmul.f32 0.5, %v637_v17 }
 0x67c   :  { %2489 = vtanh.f32 %v636_v21 }
 0x67d   :  { %2491 = vtanh.f32 %v639_v9 }
 0x67e   :  { %2493 = vtanh.f32 %v638_v36 }
 0x67f   :  { %2495 = vtanh.f32 %v641_v25 }
 0x680   :  { %2497 = vtanh.f32 %v640_v26 }
 0x684   :  { %v2484_v22 = vpop.eup %2483 }
 0x685   :  { %660 = vrot.lane.b32.xlu1 %v2484_v22, %s2800_s11  ;;  %v2486_v23 = vpop.eup %2485 }
 0x688   :  { %v2488_v33 = vpop.eup %2487 }
 0x689   :  { %724 = vrot.lane.b32.xlu1 %v2486_v23, %s2800_s11  ;;  %662 = vrot.lane.b32.xlu0 %v2488_v33, %s2800_s11  ;;  %v2490_v24 = vpop.eup %2489 }
 0x68a   :  { %v2492_v29 = vpop.eup %2491 }
 0x68b   :  { %v2494_v30 = vpop.eup %2493  ;;  %v647_v31 = vmul.f32 0.5, %v2492_v29 }
 0x68c   :  { %v2496_v32 = vpop.eup %2495  ;;  %v646_v34 = vmul.f32 0.5, %v2494_v30 }
 0x68d   :  { %726 = vrot.lane.b32.xlu0 %v2490_v24, %s2800_s11  ;;  %v649_v35 = vmul.f32 0.5, %v2496_v32  ;;  %v651_v37 = vadd.f32 0.5, %v647_v31  ;;  %v2498_v41 = vpop.eup %2497 }
 0x68e   :  { %v648_v47 = vmul.f32 0.5, %v2498_v41  ;;  %v650_v50 = vadd.f32 0.5, %v646_v34 }
 0x68f   :  { %v653_v51 = vadd.f32 0.5, %v649_v35  ;;  %v656_v59 = vmul.f32 %v651_v37, %v2980_v14 }
 0x690   :  { %v652_v56 = vadd.f32 0.5, %v648_v47  ;;  %v720_v6 = vmul.f32 %v650_v50, %v2984_v19 }
 0x691   :  { %v657_v8 = vmul.f32 %v653_v51, %v2986_v20 }
 0x692   :  { %v721_v18 = vmul.f32 %v652_v56, %v2991_v7  ;;  %v2442_v7 = vld [vmem:[#allocation3 + $0x18] sm:$0xff]  }
 0x693   :  { %2209 = vmatmul.mubr.msk.bf16.gmra.mxu0 %vm161_vm0, %v2442_v7 }
 0x694   :  { %256 = vmatprep.mubr.bf16.mxu0 %v2803_v0 }
 0x6f7   :  { %v661_v43 = vpop.permute.xlu1 %660 }
 0x6f8   :  { %v666_v45 = vmul.f32 %v661_v43, %v651_v37 }
 0x6fa   :  { %670 = vrot.lane.b32.xlu1 %v666_v45, %s2804_s4 }
 0x6fb   :  { %v725_v52 = vpop.permute.xlu1 %724  ;;  %v663_v53 = vpop.permute.xlu0 %662 }
 0x6fc   :  { %v730_v54 = vmul.f32 %v725_v52, %v650_v50  ;;  %v667_v55 = vmul.f32 %v663_v53, %v653_v51 }
 0x6fe   :  { %734 = vrot.lane.b32.xlu1 %v730_v54, %s2804_s4  ;;  %672 = vrot.lane.b32.xlu0 %v667_v55, %s2804_s4 }
 0x6ff   :  { %v727_v57 = vpop.permute.xlu0 %726 }
 0x700   :  { %v731_v58 = vmul.f32 %v727_v57, %v652_v56 }
 0x702   :  { %736 = vrot.lane.b32.xlu0 %v731_v58, %s2804_s4 }
 0x76c   :  { %v671_v60 = vpop.permute.xlu1 %670 }
 0x76d   :  { %v3033_v4 = vadd.f32 %v671_v60, %v656_v59 }
 0x76f   :  { %2499 = vtanh.f32 %v3033_v4 }
 0x770   :  { %v735_v12 = vpop.permute.xlu1 %734  ;;  %v673_v15 = vpop.permute.xlu0 %672 }
 0x771   :  { %v3038_v16 = vadd.f32 %v735_v12, %v720_v6  ;;  %v3040_v17 = vadd.f32 %v673_v15, %v657_v8 }
 0x773   :  { %2501 = vtanh.f32 %v3038_v16 }
 0x774   :  { %2503 = vtanh.f32 %v3040_v17  ;;  %v737_v14 = vpop.permute.xlu0 %736 }
 0x775   :  { %v3045_v21 = vadd.f32 %v737_v14, %v721_v18 }
 0x777   :  { %2505 = vtanh.f32 %v3045_v21 }
 0x77c   :  { %v2500_v19 = vpop.eup %2499 }
 0x77d   :  { %682 = vrot.lane.b32.xlu1 %v2500_v19, %s2800_s11 }
 0x780   :  { %v2502_v20 = vpop.eup %2501 }
 0x781   :  { %v2504_v22 = vpop.eup %2503  ;;  %746 = vrot.lane.b32.xlu1 %v2502_v20, %s2800_s11 }
 0x782   :  { %684 = vrot.lane.b32.xlu0 %v2504_v22, %s2800_s11 }
 0x784   :  { %v2506_v23 = vpop.eup %2505 }
 0x786   :  { %748 = vrot.lane.b32.xlu0 %v2506_v23, %s2800_s11 }
 0x7ef   :  { %v683_v33 = vpop.permute.xlu1 %682 }
 0x7f0   :  { %v3054_v9 = vmul.f32 %v683_v33, %v651_v37 }
 0x7f3   :  { %v747_v25 = vpop.permute.xlu1 %746 }
 0x7f4   :  { %v685_v24 = vpop.permute.xlu0 %684  ;;  %v752_v30 = vmul.f32 %v747_v25, %v650_v50  ;;  %v248_v50 = vpop.f32.mrf.mxu0 }
 0x7f5   :  { %v3056_v36 = vmul.f32 %v685_v24, %v653_v51 }
 0x7f6   :  { %v250_v53 = vpop.f32.mrf.mxu0 }
 0x7f7   :  { %v2322_v26 = vpack.i.bf16 %v3056_v36, %v3054_v9  ;;  %v251_v57 = vadd.f32 %v250_v53, %v2966_v13 }
 0x7f8   :  { %v749_v29 = vpop.permute.xlu0 %748  ;;  %v252_v54 = vpop.f32.mrf.mxu0 }
 0x7f9   :  { %v753_v31 = vmul.f32 %v749_v29, %v652_v56  ;;  %2323 = vrot.lane.b32.xlu0 %v2322_v26, %s2800_s11  ;;  %v249_v56 = vadd.f32 %v248_v50, %v2879_v10  ;;  %v253_v14 = vadd.f32 %v252_v54, %v2879_v10 }
 0x7fa   :  { %v254_v58 = vpop.f32.mrf.mxu0 }
 0x7fb   :  { %v2317_v32 = vpack.i.bf16 %v753_v31, %v752_v30  ;;  %v255_v8 = vadd.f32 %v254_v58, %v2966_v13 }
 0x7fd   :  { %2318 = vrot.lane.b32.xlu1 %v2317_v32, %s2804_s4 }
 0x86b   :  { %v2324_v34 = vpop.permute.xlu0 %2323 }
 0x86c   :  { %v2326_v41 = vunpack.i.h.bf16 %v2324_v34  ;;  %v2325_v43 = vunpack.i.l.bf16 %v2324_v34 }
 0x86f   :  { %v2319_v35 = vpop.permute.xlu1 %2318 }
 0x870   :  { %v2321_v37 = vunpack.i.h.bf16 %v2319_v35  ;;  %v2320_v45 = vunpack.i.l.bf16 %v2319_v35 }
 0x872   :  { %v770_v47 = vsel %vm161_vm0, %v2320_v45, %v2325_v43  ;;  %v771_v51 = vsel %vm161_vm0, %v2321_v37, %v2326_v41 }
 0x873   :  { %v772_v52 = vpack.c.bf16 %v771_v51, %v770_v47 }
 0x875   :  { %2228 = vmatmul.mubr.msk.bf16.vlgmr.msra.gmra.mxu1 %vm402_vm1, %v772_v52 }
 0x876   :  { %970 = vmatpush1.bf16.msra.mxu1 %v2895_v39  ;;  %993 = vmatprep.mubr.bf16.mxu1 %v2803_v0 }
 0x877   :  { %971 = vmatprep.subr.bf16.mxu1 %v2897_v40 }
 0x87a   :  { %972 = vmatpush1.bf16.msra.mxu1 %v2903_v42 }
 0x87b   :  { %973 = vmatprep.subr.bf16.mxu1 %v2906_v44 }
 0x87e   :  { %974 = vmatpush1.bf16.msra.mxu1 %v2913_v46 }
 0x87f   :  { %975 = vmatprep.subr.bf16.mxu1 %v2925_v48 }
 0x882   :  { %976 = vmatpush1.bf16.msra.mxu1 %v2927_v49 }
 0x883   :  { %1339 = vmatprep.subr.bf16.mxu1 %v2893_v38 }
 0x935   :  { %v810_v55 = vpop.f32.mrf.mxu1 }
 0x936   :  { %v819_v12 = vadd.f32 %v810_v55, %v249_v56 }
 0x937   :  { %v812_v59 = vpop.f32.mrf.mxu1 }
 0x938   :  { %v820_v60 = vadd.f32 %v812_v59, %v251_v57  ;;  %v823_v24 = vmul.f32 0.5, %v819_v12 }
 0x939   :  { %v814_v6 = vpop.f32.mrf.mxu1 }
 0x93a   :  { %2507 = vtanh.f32 %v820_v60  ;;  %v821_v19 = vadd.f32 %v814_v6, %v253_v14  ;;  %v824_v33 = vmul.f32 0.5, %v820_v60 }
 0x93b   :  { %v816_v15 = vpop.f32.mrf.mxu1  ;;  %2509 = vtanh.f32 %v819_v12 }
 0x93c   :  { %v822_v18 = vadd.f32 %v816_v15, %v255_v8  ;;  %v825_v26 = vmul.f32 0.5, %v821_v19 }
 0x93e   :  { %2511 = vtanh.f32 %v822_v18  ;;  %v826_v25 = vmul.f32 0.5, %v822_v18 }
 0x93f   :  { %2513 = vtanh.f32 %v821_v19 }
 0x940   :  { %2515 = vtanh.f32 %v824_v33 }
 0x941   :  { %2517 = vtanh.f32 %v823_v24 }
 0x942   :  { %2519 = vtanh.f32 %v826_v25 }
 0x943   :  { %2521 = vtanh.f32 %v825_v26 }
 0x947   :  { %v2508_v20 = vpop.eup %2507 }
 0x948   :  { %845 = vrot.lane.b32.xlu1 %v2508_v20, %s2800_s11  ;;  %v2510_v22 = vpop.eup %2509 }
 0x94b   :  { %v2512_v23 = vpop.eup %2511 }
 0x94c   :  { %909 = vrot.lane.b32.xlu1 %v2510_v22, %s2800_s11  ;;  %847 = vrot.lane.b32.xlu0 %v2512_v23, %s2800_s11  ;;  %v2514_v7 = vpop.eup %2513 }
 0x94d   :  { %v2516_v29 = vpop.eup %2515 }
 0x94e   :  { %v2518_v30 = vpop.eup %2517  ;;  %v832_v31 = vmul.f32 0.5, %v2516_v29 }
 0x94f   :  { %v2520_v32 = vpop.eup %2519  ;;  %v831_v34 = vmul.f32 0.5, %v2518_v30 }
 0x950   :  { %911 = vrot.lane.b32.xlu0 %v2514_v7, %s2800_s11  ;;  %v834_v35 = vmul.f32 0.5, %v2520_v32  ;;  %v836_v41 = vadd.f32 0.5, %v832_v31  ;;  %v2522_v43 = vpop.eup %2521 }
 0x951   :  { %v833_v47 = vmul.f32 0.5, %v2522_v43  ;;  %v835_v51 = vadd.f32 0.5, %v831_v34 }
 0x952   :  { %v838_v52 = vadd.f32 0.5, %v834_v35  ;;  %v841_v59 = vmul.f32 %v836_v41, %v3033_v4 }
 0x953   :  { %v837_v56 = vadd.f32 0.5, %v833_v47  ;;  %v905_v8 = vmul.f32 %v835_v51, %v3038_v16 }
 0x954   :  { %v842_v12 = vmul.f32 %v838_v52, %v3040_v17 }
 0x955   :  { %v906_v20 = vmul.f32 %v837_v56, %v3045_v21  ;;  %v2443_v21 = vld [vmem:[#allocation3 + $0x20] sm:$0xff]  }
 0x956   :  { %2210 = vmatmul.mubr.msk.bf16.gmra.mxu0 %vm161_vm0, %v2443_v21 }
 0x957   :  { %266 = vmatprep.mubr.bf16.mxu0 %v2803_v0 }
 0x9ba   :  { %v846_v37 = vpop.permute.xlu1 %845 }
 0x9bb   :  { %v851_v45 = vmul.f32 %v846_v37, %v836_v41 }
 0x9bd   :  { %855 = vrot.lane.b32.xlu1 %v851_v45, %s2804_s4 }
 0x9be   :  { %v910_v50 = vpop.permute.xlu1 %909  ;;  %v848_v53 = vpop.permute.xlu0 %847 }
 0x9bf   :  { %v915_v54 = vmul.f32 %v910_v50, %v835_v51  ;;  %v852_v55 = vmul.f32 %v848_v53, %v838_v52 }
 0x9c1   :  { %919 = vrot.lane.b32.xlu1 %v915_v54, %s2804_s4  ;;  %857 = vrot.lane.b32.xlu0 %v852_v55, %s2804_s4 }
 0x9c2   :  { %v912_v57 = vpop.permute.xlu0 %911 }
 0x9c3   :  { %v916_v58 = vmul.f32 %v912_v57, %v837_v56 }
 0x9c5   :  { %921 = vrot.lane.b32.xlu0 %v916_v58, %s2804_s4 }
 0xa2f   :  { %v856_v60 = vpop.permute.xlu1 %855 }
 0xa30   :  { %v3087_v6 = vadd.f32 %v856_v60, %v841_v59 }
 0xa32   :  { %2523 = vtanh.f32 %v3087_v6 }
 0xa33   :  { %v920_v15 = vpop.permute.xlu1 %919  ;;  %v858_v18 = vpop.permute.xlu0 %857 }
 0xa34   :  { %v3092_v14 = vadd.f32 %v920_v15, %v905_v8  ;;  %v3094_v19 = vadd.f32 %v858_v18, %v842_v12 }
 0xa36   :  { %2525 = vtanh.f32 %v3092_v14 }
 0xa37   :  { %2527 = vtanh.f32 %v3094_v19  ;;  %v922_v4 = vpop.permute.xlu0 %921 }
 0xa38   :  { %v3099_v22 = vadd.f32 %v922_v4, %v906_v20 }
 0xa3a   :  { %2529 = vtanh.f32 %v3099_v22 }
 0xa3f   :  { %v2524_v16 = vpop.eup %2523 }
 0xa40   :  { %867 = vrot.lane.b32.xlu1 %v2524_v16, %s2800_s11 }
 0xa43   :  { %v2526_v17 = vpop.eup %2525 }
 0xa44   :  { %v2528_v23 = vpop.eup %2527  ;;  %931 = vrot.lane.b32.xlu1 %v2526_v17, %s2800_s11 }
 0xa45   :  { %869 = vrot.lane.b32.xlu0 %v2528_v23, %s2800_s11 }
 0xa47   :  { %v2530_v7 = vpop.eup %2529 }
 0xa49   :  { %933 = vrot.lane.b32.xlu0 %v2530_v7, %s2800_s11 }
 0xab2   :  { %v868_v33 = vpop.permute.xlu1 %867 }
 0xab3   :  { %v3108_v25 = vmul.f32 %v868_v33, %v836_v41 }
 0xab6   :  { %v932_v29 = vpop.permute.xlu1 %931 }
 0xab7   :  { %v870_v24 = vpop.permute.xlu0 %869  ;;  %v937_v32 = vmul.f32 %v932_v29, %v835_v51  ;;  %v258_v51 = vpop.f32.mrf.mxu0 }
 0xab8   :  { %v3110_v26 = vmul.f32 %v870_v24, %v838_v52  ;;  %v259_v57 = vadd.f32 %v258_v51, %v2879_v10 }
 0xab9   :  { %v260_v55 = vpop.f32.mrf.mxu0 }
 0xaba   :  { %v2332_v30 = vpack.i.bf16 %v3110_v26, %v3108_v25 }
 0xabb   :  { %v934_v31 = vpop.permute.xlu0 %933 }
 0xabc   :  { %v938_v34 = vmul.f32 %v934_v31, %v837_v56  ;;  %2333 = vrot.lane.b32.xlu0 %v2332_v30, %s2800_s11  ;;  %v262_v56 = vpop.f32.mrf.mxu0 }
 0xabe   :  { %v2327_v35 = vpack.i.bf16 %v938_v34, %v937_v32  ;;  %v264_v58 = vpop.f32.mrf.mxu0 }
 0xac0   :  { %2328 = vrot.lane.b32.xlu1 %v2327_v35, %s2804_s4 }
 0xb2e   :  { %v2334_v43 = vpop.permute.xlu0 %2333 }
 0xb2f   :  { %v2336_v45 = vunpack.i.h.bf16 %v2334_v43  ;;  %v2335_v47 = vunpack.i.l.bf16 %v2334_v43 }
 0xb32   :  { %v2329_v37 = vpop.permute.xlu1 %2328 }
 0xb33   :  { %v2331_v41 = vunpack.i.h.bf16 %v2329_v37  ;;  %v2330_v50 = vunpack.i.l.bf16 %v2329_v37 }
 0xb35   :  { %v955_v52 = vsel %vm161_vm0, %v2330_v50, %v2335_v47  ;;  %v956_v53 = vsel %vm161_vm0, %v2331_v41, %v2336_v45 }
 0xb36   :  { %v957_v54 = vpack.c.bf16 %v956_v53, %v955_v52 }
 0xb38   :  { %2231 = vmatmul.mubr.msk.bf16.vlgmr.msra.gmra.mxu1 %vm402_vm1, %v957_v54 }
 0xb39   :  { %1340 = vmatpush1.bf16.msra.mxu1 %v2895_v39  ;;  %1363 = vmatprep.mubr.bf16.mxu1 %v2803_v0 }
 0xb3a   :  { %1341 = vmatprep.subr.bf16.mxu1 %v2897_v40  ;;  %v261_v40 = vadd.f32 %v260_v55, %v2966_v13 }
 0xb3d   :  { %1342 = vmatpush1.bf16.msra.mxu1 %v2903_v42 }
 0xb3e   :  { %1343 = vmatprep.subr.bf16.mxu1 %v2906_v44 }
 0xb41   :  { %1344 = vmatpush1.bf16.msra.mxu1 %v2913_v46  ;;  %v265_v46 = vadd.f32 %v264_v58, %v2966_v13 }
 0xb42   :  { %1345 = vmatprep.subr.bf16.mxu1 %v2925_v48 }
 0xb45   :  { %1346 = vmatpush1.bf16.msra.mxu1 %v2927_v49 }
 0xb46   :  { %1709 = vmatprep.subr.bf16.mxu1 %v2893_v38  ;;  %v263_v38 = vadd.f32 %v262_v56, %v2879_v10 }
 0xbf8   :  { %v995_v39 = vpop.f32.mrf.mxu1 }
 0xbf9   :  { %v1004_v60 = vadd.f32 %v995_v39, %v259_v57 }
 0xbfa   :  { %v997_v42 = vpop.f32.mrf.mxu1 }
 0xbfb   :  { %v1005_v59 = vadd.f32 %v997_v42, %v261_v40  ;;  %v1008_v23 = vmul.f32 0.5, %v1004_v60 }
 0xbfc   :  { %v999_v44 = vpop.f32.mrf.mxu1 }
 0xbfd   :  { %2531 = vtanh.f32 %v1005_v59  ;;  %v1006_v15 = vadd.f32 %v999_v44, %v263_v38  ;;  %v1009_v17 = vmul.f32 0.5, %v1005_v59 }
 0xbfe   :  { %v1001_v8 = vpop.f32.mrf.mxu1  ;;  %2533 = vtanh.f32 %v1004_v60 }
 0xbff   :  { %v1007_v12 = vadd.f32 %v1001_v8, %v265_v46  ;;  %v1010_v21 = vmul.f32 0.5, %v1006_v15 }
 0xc01   :  { %2535 = vtanh.f32 %v1007_v12  ;;  %v1011_v7 = vmul.f32 0.5, %v1007_v12 }
 0xc02   :  { %2537 = vtanh.f32 %v1006_v15 }
 0xc03   :  { %2539 = vtanh.f32 %v1009_v17 }
 0xc04   :  { %2541 = vtanh.f32 %v1008_v23 }
 0xc05   :  { %2543 = vtanh.f32 %v1011_v7 }
 0xc06   :  { %2545 = vtanh.f32 %v1010_v21 }
 0xc0a   :  { %v2532_v18 = vpop.eup %2531 }
 0xc0b   :  { %1030 = vrot.lane.b32.xlu1 %v2532_v18, %s2800_s11  ;;  %v2534_v20 = vpop.eup %2533 }
 0xc0e   :  { %v2536_v4 = vpop.eup %2535 }
 0xc0f   :  { %1094 = vrot.lane.b32.xlu1 %v2534_v20, %s2800_s11  ;;  %1032 = vrot.lane.b32.xlu0 %v2536_v4, %s2800_s11  ;;  %v2538_v16 = vpop.eup %2537 }
 0xc10   :  { %v2540_v33 = vpop.eup %2539 }
 0xc11   :  { %v2542_v24 = vpop.eup %2541  ;;  %v1017_v29 = vmul.f32 0.5, %v2540_v33 }
 0xc12   :  { %v2544_v30 = vpop.eup %2543  ;;  %v1016_v31 = vmul.f32 0.5, %v2542_v24 }
 0xc13   :  { %1096 = vrot.lane.b32.xlu0 %v2538_v16, %s2800_s11  ;;  %v1019_v32 = vmul.f32 0.5, %v2544_v30  ;;  %v1021_v34 = vadd.f32 0.5, %v1017_v29  ;;  %v2546_v35 = vpop.eup %2545 }
 0xc14   :  { %v1018_v45 = vmul.f32 0.5, %v2546_v35  ;;  %v1020_v47 = vadd.f32 0.5, %v1016_v31 }
 0xc15   :  { %v1023_v41 = vadd.f32 0.5, %v1019_v32  ;;  %v1026_v39 = vmul.f32 %v1021_v34, %v3087_v6 }
 0xc16   :  { %v1022_v51 = vadd.f32 0.5, %v1018_v45  ;;  %v1090_v58 = vmul.f32 %v1020_v47, %v3092_v14 }
 0xc17   :  { %v1027_v42 = vmul.f32 %v1023_v41, %v3094_v19  ;;  %v2444_v19 = vld [vmem:[#allocation3 + $0x28] sm:$0xff]  }
 0xc18   :  { %v1091_v8 = vmul.f32 %v1022_v51, %v3099_v22  ;;  %2211 = vmatmul.mubr.msk.bf16.gmra.mxu0 %vm161_vm0, %v2444_v19 }
 0xc19   :  { %1178 = vmatprep.mubr.bf16.mxu0 %v2803_v0 }
 0xc7d   :  { %v1031_v43 = vpop.permute.xlu1 %1030 }
 0xc7e   :  { %v1036_v37 = vmul.f32 %v1031_v43, %v1021_v34 }
 0xc80   :  { %1040 = vrot.lane.b32.xlu1 %v1036_v37, %s2804_s4 }
 0xc81   :  { %v1095_v50 = vpop.permute.xlu1 %1094  ;;  %v1033_v52 = vpop.permute.xlu0 %1032 }
 0xc82   :  { %v1100_v53 = vmul.f32 %v1095_v50, %v1020_v47  ;;  %v1037_v54 = vmul.f32 %v1033_v52, %v1023_v41  ;;  %v3180_v50 = vld [vmem:[#allocation8 + $0x20] ss:$8 sps:$4 sm:$0xff]   ;;  %v3183_v52 = vld [vmem:[#allocation8 + $0x14] ss:$8 sps:$4 sm:$0xff]  }
 0xc84   :  { %1104 = vrot.lane.b32.xlu1 %v1100_v53, %s2804_s4  ;;  %1042 = vrot.lane.b32.xlu0 %v1037_v54, %s2804_s4  ;;  %v3186_v53 = vld [vmem:[#allocation8 + $0x10] ss:$8 sps:$4 sm:$0xff]  }
 0xc85   :  { %v1097_v55 = vpop.permute.xlu0 %1096 }
 0xc86   :  { %v1101_v56 = vmul.f32 %v1097_v55, %v1022_v51 }
 0xc88   :  { %1106 = vrot.lane.b32.xlu0 %v1101_v56, %s2804_s4 }
 0xcd8   :  { %v268_v54 = vpop.f32.mrf.mxu0 }
 0xcf2   :  { %v1041_v57 = vpop.permute.xlu1 %1040 }
 0xcf3   :  { %v3141_v40 = vadd.f32 %v1041_v57, %v1026_v39 }
 0xcf5   :  { %2547 = vtanh.f32 %v3141_v40 }
 0xcf6   :  { %v1105_v59 = vpop.permute.xlu1 %1104  ;;  %v1043_v44 = vpop.permute.xlu0 %1042 }
 0xcf7   :  { %v3146_v46 = vadd.f32 %v1105_v59, %v1090_v58  ;;  %v3148_v60 = vadd.f32 %v1043_v44, %v1027_v42  ;;  %v269_v42 = vadd.f32 %v268_v54, %v2879_v10 }
 0xcf9   :  { %2549 = vtanh.f32 %v3146_v46 }
 0xcfa   :  { %2551 = vtanh.f32 %v3148_v60  ;;  %v1107_v6 = vpop.permute.xlu0 %1106 }
 0xcfb   :  { %v3153_v12 = vadd.f32 %v1107_v6, %v1091_v8 }
 0xcfd   :  { %2553 = vtanh.f32 %v3153_v12 }
 0xd02   :  { %v2548_v14 = vpop.eup %2547 }
 0xd03   :  { %1052 = vrot.lane.b32.xlu1 %v2548_v14, %s2800_s11 }
 0xd06   :  { %v2550_v38 = vpop.eup %2549 }
 0xd07   :  { %v2552_v15 = vpop.eup %2551  ;;  %1116 = vrot.lane.b32.xlu1 %v2550_v38, %s2800_s11 }
 0xd08   :  { %1054 = vrot.lane.b32.xlu0 %v2552_v15, %s2800_s11 }
 0xd0a   :  { %v2554_v22 = vpop.eup %2553 }
 0xd0c   :  { %1118 = vrot.lane.b32.xlu0 %v2554_v22, %s2800_s11 }
 0xd75   :  { %v1053_v18 = vpop.permute.xlu1 %1052 }
 0xd76   :  { %v3162_v4 = vmul.f32 %v1053_v18, %v1021_v34 }
 0xd79   :  { %v1117_v17 = vpop.permute.xlu1 %1116 }
 0xd7a   :  { %v1055_v20 = vpop.permute.xlu0 %1054  ;;  %v1122_v21 = vmul.f32 %v1117_v17, %v1020_v47  ;;  %v3173_v47 = vld [vmem:[#allocation8 + $0x30] ss:$8 sps:$4 sm:$0xff]  }
 0xd7b   :  { %v3164_v16 = vmul.f32 %v1055_v20, %v1023_v41  ;;  %v3177_v41 = vld [vmem:[#allocation8 + $0x24] ss:$8 sps:$4 sm:$0xff]  }
 0xd7d   :  { %v2342_v23 = vpack.i.bf16 %v3164_v16, %v3162_v4 }
 0xd7e   :  { %v1119_v7 = vpop.permute.xlu0 %1118 }
 0xd7f   :  { %v1123_v33 = vmul.f32 %v1119_v7, %v1022_v51  ;;  %2343 = vrot.lane.b32.xlu0 %v2342_v23, %s2800_s11  ;;  %v270_v51 = vpop.f32.mrf.mxu0 }
 0xd80   :  { %v271_v57 = vadd.f32 %v270_v51, %v2966_v13 }
 0xd81   :  { %v2337_v24 = vpack.i.bf16 %v1123_v33, %v1122_v21  ;;  %v272_v55 = vpop.f32.mrf.mxu0 }
 0xd83   :  { %2338 = vrot.lane.b32.xlu1 %v2337_v24, %s2804_s4  ;;  %v274_v56 = vpop.f32.mrf.mxu0 }
 0xd84   :  { %v275_v8 = vadd.f32 %v274_v56, %v2966_v13 }
 0xdf1   :  { %v2344_v29 = vpop.permute.xlu0 %2343 }
 0xdf2   :  { %v2346_v31 = vunpack.i.h.bf16 %v2344_v29  ;;  %v2345_v32 = vunpack.i.l.bf16 %v2344_v29 }
 0xdf5   :  { %v2339_v30 = vpop.permute.xlu1 %2338 }
 0xdf6   :  { %v2341_v34 = vunpack.i.h.bf16 %v2339_v30  ;;  %v2340_v35 = vunpack.i.l.bf16 %v2339_v30 }
 0xdf8   :  { %v1140_v43 = vsel %vm161_vm0, %v2340_v35, %v2345_v32  ;;  %v1141_v37 = vsel %vm161_vm0, %v2341_v34, %v2346_v31 }
 0xdf9   :  { %v1142_v45 = vpack.c.bf16 %v1141_v37, %v1140_v43 }
 0xdfb   :  { %2234 = vmatmul.mubr.msk.bf16.vlgmr.msra.gmra.mxu0 %vm402_vm1, %v1142_v45 }
 0xdfc   :  { %1525 = vmatpush1.bf16.msra.mxu0 %v3173_v47  ;;  %1548 = vmatprep.mubr.bf16.mxu0 %v2803_v0 }
 0xdfd   :  { %1526 = vmatprep.subr.bf16.mxu0 %v3177_v41 }
 0xe00   :  { %1527 = vmatpush1.bf16.msra.mxu0 %v3180_v50 }
 0xe01   :  { %1528 = vmatprep.subr.bf16.mxu0 %v3183_v52 }
 0xe04   :  { %1529 = vmatpush1.bf16.msra.mxu0 %v3186_v53 }
 0xe05   :  { %1530 = vmatprep.subr.bf16.mxu0 %v2925_v48 }
 0xe08   :  { %1531 = vmatpush1.bf16.msra.mxu0 %v2927_v49  ;;  %v273_v49 = vadd.f32 %v272_v55, %v2879_v10 }
 0xebb   :  { %v1180_v39 = vpop.f32.mrf.mxu0 }
 0xebc   :  { %v1189_v6 = vadd.f32 %v1180_v39, %v269_v42 }
 0xebd   :  { %v1182_v58 = vpop.f32.mrf.mxu0 }
 0xebe   :  { %v1190_v59 = vadd.f32 %v1182_v58, %v271_v57  ;;  %v1193_v17 = vmul.f32 0.5, %v1189_v6 }
 0xebf   :  { %v1184_v44 = vpop.f32.mrf.mxu0 }
 0xec0   :  { %2555 = vtanh.f32 %v1190_v59  ;;  %v1191_v19 = vadd.f32 %v1184_v44, %v273_v49  ;;  %v1194_v20 = vmul.f32 0.5, %v1190_v59 }
 0xec1   :  { %v1186_v14 = vpop.f32.mrf.mxu0  ;;  %2557 = vtanh.f32 %v1189_v6 }
 0xec2   :  { %v1192_v48 = vadd.f32 %v1186_v14, %v275_v8  ;;  %v1195_v7 = vmul.f32 0.5, %v1191_v19 }
 0xec4   :  { %2559 = vtanh.f32 %v1192_v48  ;;  %v1196_v23 = vmul.f32 0.5, %v1192_v48 }
 0xec5   :  { %2561 = vtanh.f32 %v1191_v19 }
 0xec6   :  { %2563 = vtanh.f32 %v1194_v20 }
 0xec7   :  { %2565 = vtanh.f32 %v1193_v17 }
 0xec8   :  { %2567 = vtanh.f32 %v1196_v23 }
 0xec9   :  { %2569 = vtanh.f32 %v1195_v7 }
 0xecd   :  { %v2556_v38 = vpop.eup %2555 }
 0xece   :  { %1215 = vrot.lane.b32.xlu1 %v2556_v38, %s2800_s11  ;;  %v2558_v15 = vpop.eup %2557 }
 0xed1   :  { %v2560_v22 = vpop.eup %2559 }
 0xed2   :  { %1279 = vrot.lane.b32.xlu1 %v2558_v15, %s2800_s11  ;;  %1217 = vrot.lane.b32.xlu0 %v2560_v22, %s2800_s11  ;;  %v2562_v18 = vpop.eup %2561 }
 0xed3   :  { %v2564_v21 = vpop.eup %2563 }
 0xed4   :  { %v2566_v33 = vpop.eup %2565  ;;  %v1202_v24 = vmul.f32 0.5, %v2564_v21 }
 0xed5   :  { %v2568_v29 = vpop.eup %2567  ;;  %v1201_v30 = vmul.f32 0.5, %v2566_v33 }
 0xed6   :  { %1281 = vrot.lane.b32.xlu0 %v2562_v18, %s2800_s11  ;;  %v1204_v31 = vmul.f32 0.5, %v2568_v29  ;;  %v1206_v32 = vadd.f32 0.5, %v1202_v24  ;;  %v2570_v34 = vpop.eup %2569 }
 0xed7   :  { %v1203_v37 = vmul.f32 0.5, %v2570_v34  ;;  %v1205_v45 = vadd.f32 0.5, %v1201_v30 }
 0xed8   :  { %v1208_v54 = vadd.f32 0.5, %v1204_v31  ;;  %v1211_v59 = vmul.f32 %v1206_v32, %v3141_v40 }
 0xed9   :  { %v1207_v57 = vadd.f32 0.5, %v1203_v37  ;;  %v1275_v6 = vmul.f32 %v1205_v45, %v3146_v46 }
 0xeda   :  { %v1212_v14 = vmul.f32 %v1208_v54, %v3148_v60 }
 0xedb   :  { %v1276_v15 = vmul.f32 %v1207_v57, %v3153_v12 }
 0xf40   :  { %v1216_v35 = vpop.permute.xlu1 %1215 }
 0xf41   :  { %v1221_v43 = vmul.f32 %v1216_v35, %v1206_v32 }
 0xf43   :  { %1225 = vrot.lane.b32.xlu1 %v1221_v43, %s2804_s4 }
 0xf44   :  { %v1280_v51 = vpop.permute.xlu1 %1279  ;;  %v1218_v55 = vpop.permute.xlu0 %1217 }
 0xf45   :  { %v1285_v56 = vmul.f32 %v1280_v51, %v1205_v45  ;;  %v1222_v39 = vmul.f32 %v1218_v55, %v1208_v54 }
 0xf47   :  { %1289 = vrot.lane.b32.xlu1 %v1285_v56, %s2804_s4  ;;  %1227 = vrot.lane.b32.xlu0 %v1222_v39, %s2804_s4  ;;  %v2709_v39 = vld [vmem:[#allocation8] ss:$8 sps:$4 sm:$0xff]  }
 0xf48   :  { %v1282_v58 = vpop.permute.xlu0 %1281 }
 0xf49   :  { %v1286_v42 = vmul.f32 %v1282_v58, %v1207_v57  ;;  %v281_v58 = vadd.f32 %v2950_v62, %v2966_v13 }
 0xf4b   :  { %1291 = vrot.lane.b32.xlu0 %v1286_v42, %s2804_s4 }
 0xfb5   :  { %v1226_v44 = vpop.permute.xlu1 %1225 }
 0xfb6   :  { %v3204_v8 = vadd.f32 %v1226_v44, %v1211_v59  ;;  %v283_v44 = vadd.f32 %v2952_v63, %v2879_v10 }
 0xfb8   :  { %2571 = vtanh.f32 %v3204_v8 }
 0xfb9   :  { %v1290_v48 = vpop.permute.xlu1 %1289  ;;  %v1228_v49 = vpop.permute.xlu0 %1227 }
 0xfba   :  { %v3209_v19 = vadd.f32 %v1290_v48, %v1275_v6  ;;  %v3211_v38 = vadd.f32 %v1228_v49, %v1212_v14 }
 0xfbc   :  { %2573 = vtanh.f32 %v3209_v19 }
 0xfbd   :  { %2575 = vtanh.f32 %v3211_v38  ;;  %v1292_v40 = vpop.permute.xlu0 %1291 }
 0xfbe   :  { %v3216_v22 = vadd.f32 %v1292_v40, %v1276_v15 }
 0xfc0   :  { %2577 = vtanh.f32 %v3216_v22 }
 0xfc5   :  { %v2572_v46 = vpop.eup %2571 }
 0xfc6   :  { %1237 = vrot.lane.b32.xlu1 %v2572_v46, %s2800_s11 }
 0xfc9   :  { %v2574_v60 = vpop.eup %2573 }
 0xfca   :  { %v2576_v18 = vpop.eup %2575  ;;  %1301 = vrot.lane.b32.xlu1 %v2574_v60, %s2800_s11 }
 0xfcb   :  { %1239 = vrot.lane.b32.xlu0 %v2576_v18, %s2800_s11 }
 0xfcd   :  { %v2578_v20 = vpop.eup %2577 }
 0xfcf   :  { %1303 = vrot.lane.b32.xlu0 %v2578_v20, %s2800_s11 }
0x1038   :  { %v1238_v12 = vpop.permute.xlu1 %1237 }
0x1039   :  { %v3223_v23 = vmul.f32 %v1238_v12, %v1206_v32 }
0x103c   :  { %v1302_v21 = vpop.permute.xlu1 %1301 }
0x103d   :  { %v1240_v17 = vpop.permute.xlu0 %1239  ;;  %v1307_v29 = vmul.f32 %v1302_v21, %v1205_v45  ;;  %v2708_v45 = vld [vmem:[#allocation8 + $0x4] ss:$8 sps:$4 sm:$0xff]  }
0x103e   :  { %v3225_v7 = vmul.f32 %v1240_v17, %v1208_v54 }
0x1040   :  { %v2352_v33 = vpack.i.bf16 %v3225_v7, %v3223_v23 }
0x1041   :  { %v1304_v24 = vpop.permute.xlu0 %1303 }
0x1042   :  { %v1308_v30 = vmul.f32 %v1304_v24, %v1207_v57  ;;  %2353 = vrot.lane.b32.xlu0 %v2352_v33, %s2800_s11 }
0x1044   :  { %v2347_v31 = vpack.i.bf16 %v1308_v30, %v1307_v29 }
0x1046   :  { %2348 = vrot.lane.b32.xlu1 %v2347_v31, %s2804_s4 }
0x10b4   :  { %v2354_v34 = vpop.permute.xlu0 %2353 }
0x10b5   :  { %v2356_v43 = vunpack.i.h.bf16 %v2354_v34  ;;  %v2355_v37 = vunpack.i.l.bf16 %v2354_v34 }
0x10b8   :  { %v2349_v35 = vpop.permute.xlu1 %2348 }
0x10b9   :  { %v2351_v32 = vunpack.i.h.bf16 %v2349_v35  ;;  %v2350_v51 = vunpack.i.l.bf16 %v2349_v35 }
0x10bb   :  { %v1325_v54 = vsel %vm161_vm0, %v2350_v51, %v2355_v37  ;;  %v1326_v55 = vsel %vm161_vm0, %v2351_v32, %v2356_v43 }
0x10bc   :  { %v1327_v56 = vpack.c.bf16 %v1326_v55, %v1325_v54 }
0x10be   :  { %2237 = vmatmul.mubr.msk.bf16.vlgmr.msra.gmra.mxu1 %vm402_vm1, %v1327_v56 }
0x10bf   :  { %1710 = vmatpush1.bf16.msra.mxu1 %v3173_v47  ;;  %1733 = vmatprep.mubr.bf16.mxu1 %v2803_v0  ;;  %v279_v0 = vadd.f32 %v2948_v61, %v2879_v10 }
0x10c0   :  { %1711 = vmatprep.subr.bf16.mxu1 %v3177_v41 }
0x10c3   :  { %1712 = vmatpush1.bf16.msra.mxu1 %v3180_v50  ;;  %v285_v50 = vadd.f32 %v2954_v1, %v2966_v13 }
0x10c4   :  { %1713 = vmatprep.subr.bf16.mxu1 %v3183_v52 }
0x10c7   :  { %1714 = vmatpush1.bf16.msra.mxu1 %v3186_v53 }
0x10c8   :  { %1715 = vmatprep.subr.bf16.mxu1 %v2708_v45 }
0x10cb   :  { %1716 = vmatpush1.bf16.msra.mxu1 %v2709_v39 }
0x117e   :  { %v1365_v57 = vpop.f32.mrf.mxu1 }
0x117f   :  { %v1374_v52 = vadd.f32 %v1365_v57, %v279_v0 }
0x1180   :  { %v1367_v42 = vpop.f32.mrf.mxu1 }
0x1181   :  { %v1375_v47 = vadd.f32 %v1367_v42, %v281_v58  ;;  %v1378_v49 = vmul.f32 0.5, %v1374_v52 }
0x1182   :  { %v1369_v41 = vpop.f32.mrf.mxu1 }
0x1183   :  { %2579 = vtanh.f32 %v1375_v47  ;;  %v1376_v6 = vadd.f32 %v1369_v41, %v283_v44  ;;  %v1379_v48 = vmul.f32 0.5, %v1375_v47 }
0x1184   :  { %v1371_v53 = vpop.f32.mrf.mxu1  ;;  %2581 = vtanh.f32 %v1374_v52 }
0x1185   :  { %v1377_v59 = vadd.f32 %v1371_v53, %v285_v50  ;;  %v1380_v15 = vmul.f32 0.5, %v1376_v6 }
0x1187   :  { %2583 = vtanh.f32 %v1377_v59  ;;  %v1381_v63 = vmul.f32 0.5, %v1377_v59 }
0x1188   :  { %2585 = vtanh.f32 %v1376_v6 }
0x1189   :  { %2587 = vtanh.f32 %v1379_v48 }
0x118a   :  { %2589 = vtanh.f32 %v1378_v49 }
0x118b   :  { %2591 = vtanh.f32 %v1381_v63 }
0x118c   :  { %2593 = vtanh.f32 %v1380_v15 }
0x1190   :  { %v2580_v62 = vpop.eup %2579 }
0x1191   :  { %1400 = vrot.lane.b32.xlu1 %v2580_v62, %s2800_s11  ;;  %v2582_v61 = vpop.eup %2581 }
0x1194   :  { %v2584_v14 = vpop.eup %2583 }
0x1195   :  { %1464 = vrot.lane.b32.xlu1 %v2582_v61, %s2800_s11  ;;  %1402 = vrot.lane.b32.xlu0 %v2584_v14, %s2800_s11  ;;  %v2586_v1 = vpop.eup %2585 }
0x1196   :  { %v2588_v40 = vpop.eup %2587 }
0x1197   :  { %v2590_v46 = vpop.eup %2589  ;;  %v1387_v60 = vmul.f32 0.5, %v2588_v40 }
0x1198   :  { %v2592_v18 = vpop.eup %2591  ;;  %v1386_v12 = vmul.f32 0.5, %v2590_v46 }
0x1199   :  { %1466 = vrot.lane.b32.xlu0 %v2586_v1, %s2800_s11  ;;  %v1391_v20 = vadd.f32 0.5, %v1387_v60  ;;  %v1389_v17 = vmul.f32 0.5, %v2592_v18  ;;  %v2594_v21 = vpop.eup %2593 }
0x119a   :  { %v1390_v29 = vadd.f32 0.5, %v1386_v12  ;;  %v1388_v31 = vmul.f32 0.5, %v2594_v21 }
0x119b   :  { %v1393_v30 = vadd.f32 0.5, %v1389_v17  ;;  %v1396_v55 = vmul.f32 %v1391_v20, %v3204_v8 }
0x119c   :  { %v1392_v32 = vadd.f32 0.5, %v1388_v31  ;;  %v1460_v39 = vmul.f32 %v1390_v29, %v3209_v19 }
0x119d   :  { %v1397_v57 = vmul.f32 %v1393_v30, %v3211_v38 }
0x119e   :  { %v1461_v41 = vmul.f32 %v1392_v32, %v3216_v22 }
0x1203   :  { %v1401_v33 = vpop.permute.xlu1 %1400 }
0x1204   :  { %v1406_v24 = vmul.f32 %v1401_v33, %v1391_v20  ;;  %v3289_v33 = vadd.f32 %v2958_v3, %v2966_v13  ;;  %v293_v3 = vadd.f32 %v2960_v5, %v2879_v10 }
0x1206   :  { %1410 = vrot.lane.b32.xlu1 %v1406_v24, %s2804_s4 }
0x1207   :  { %v1465_v34 = vpop.permute.xlu1 %1464  ;;  %v1403_v35 = vpop.permute.xlu0 %1402 }
0x1208   :  { %v1470_v43 = vmul.f32 %v1465_v34, %v1390_v29  ;;  %v1407_v37 = vmul.f32 %v1403_v35, %v1393_v30  ;;  %v3296_v34 = vadd.f32 %v2963_v11, %v2966_v13 }
0x120a   :  { %1474 = vrot.lane.b32.xlu1 %v1470_v43, %s2804_s4  ;;  %1412 = vrot.lane.b32.xlu0 %v1407_v37, %s2804_s4 }
0x120b   :  { %v1467_v51 = vpop.permute.xlu0 %1466 }
0x120c   :  { %v1471_v54 = vmul.f32 %v1467_v51, %v1392_v32 }
0x120e   :  { %1476 = vrot.lane.b32.xlu0 %v1471_v54, %s2804_s4 }
0x1278   :  { %v1411_v56 = vpop.permute.xlu1 %1410 }
0x1279   :  { %v3257_v45 = vadd.f32 %v1411_v56, %v1396_v55 }
0x127b   :  { %2595 = vtanh.f32 %v3257_v45 }
0x127c   :  { %v1475_v58 = vpop.permute.xlu1 %1474  ;;  %v1413_v42 = vpop.permute.xlu0 %1412 }
0x127d   :  { %v3262_v0 = vadd.f32 %v1475_v58, %v1460_v39  ;;  %v3264_v47 = vadd.f32 %v1413_v42, %v1397_v57 }
0x127f   :  { %2597 = vtanh.f32 %v3262_v0 }
0x1280   :  { %2599 = vtanh.f32 %v3264_v47  ;;  %v1477_v8 = vpop.permute.xlu0 %1476 }
0x1281   :  { %v3269_v50 = vadd.f32 %v1477_v8, %v1461_v41 }
0x1283   :  { %2601 = vtanh.f32 %v3269_v50 }
0x1288   :  { %v2596_v19 = vpop.eup %2595 }
0x1289   :  { %1422 = vrot.lane.b32.xlu1 %v2596_v19, %s2800_s11 }
0x128c   :  { %v2598_v38 = vpop.eup %2597 }
0x128d   :  { %v2600_v52 = vpop.eup %2599  ;;  %1486 = vrot.lane.b32.xlu1 %v2598_v38, %s2800_s11 }
0x128e   :  { %1424 = vrot.lane.b32.xlu0 %v2600_v52, %s2800_s11 }
0x1290   :  { %v2602_v53 = vpop.eup %2601 }
0x1292   :  { %1488 = vrot.lane.b32.xlu0 %v2602_v53, %s2800_s11 }
0x12fb   :  { %v1423_v22 = vpop.permute.xlu1 %1422 }
0x12fc   :  { %v3276_v44 = vmul.f32 %v1423_v22, %v1391_v20 }
0x12ff   :  { %v1487_v62 = vpop.permute.xlu1 %1486 }
0x1300   :  { %v1425_v59 = vpop.permute.xlu0 %1424  ;;  %v1492_v1 = vmul.f32 %v1487_v62, %v1390_v29  ;;  %v289_v29 = vadd.f32 %v2956_v2, %v2879_v10 }
0x1301   :  { %v3278_v6 = vmul.f32 %v1425_v59, %v1393_v30 }
0x1303   :  { %v2362_v61 = vpack.i.bf16 %v3278_v6, %v3276_v44 }
0x1304   :  { %v1489_v14 = vpop.permute.xlu0 %1488 }
0x1305   :  { %v1493_v48 = vmul.f32 %v1489_v14, %v1392_v32  ;;  %2363 = vrot.lane.b32.xlu0 %v2362_v61, %s2800_s11 }
0x1307   :  { %v2357_v49 = vpack.i.bf16 %v1493_v48, %v1492_v1 }
0x1309   :  { %2358 = vrot.lane.b32.xlu1 %v2357_v49, %s2804_s4 }
0x1377   :  { %v2364_v63 = vpop.permute.xlu0 %2363 }
0x1378   :  { %v2366_v40 = vunpack.i.h.bf16 %v2364_v63  ;;  %v2365_v46 = vunpack.i.l.bf16 %v2364_v63 }
0x137b   :  { %v2359_v15 = vpop.permute.xlu1 %2358 }
0x137c   :  { %v2361_v60 = vunpack.i.h.bf16 %v2359_v15  ;;  %v2360_v18 = vunpack.i.l.bf16 %v2359_v15 }
0x137e   :  { %v1510_v20 = vsel %vm161_vm0, %v2360_v18, %v2365_v46  ;;  %v1511_v12 = vsel %vm161_vm0, %v2361_v60, %v2366_v40 }
0x137f   :  { %v1512_v17 = vpack.c.bf16 %v1511_v12, %v1510_v20 }
0x1381   :  { %2240 = vmatmul.mubr.msk.bf16.vlgmr.msra.gmra.mxu0 %vm402_vm1, %v1512_v17 }
0x1441   :  { %v1550_v21 = vpop.f32.mrf.mxu0 }
0x1442   :  { %v1559_v35 = vadd.f32 %v1550_v21, %v289_v29 }
0x1443   :  { %v1552_v24 = vpop.f32.mrf.mxu0 }
0x1444   :  { %v1560_v30 = vadd.f32 %v1552_v24, %v3289_v33  ;;  %v1563_v55 = vmul.f32 0.5, %v1559_v35 }
0x1445   :  { %v1554_v31 = vpop.f32.mrf.mxu0 }
0x1446   :  { %2603 = vtanh.f32 %v1560_v30  ;;  %v1561_v32 = vadd.f32 %v1554_v31, %v293_v3  ;;  %v1564_v13 = vmul.f32 0.5, %v1560_v30 }
0x1447   :  { %v1556_v43 = vpop.f32.mrf.mxu0  ;;  %2605 = vtanh.f32 %v1559_v35 }
0x1448   :  { %v1562_v37 = vadd.f32 %v1556_v43, %v3296_v34  ;;  %v1565_v5 = vmul.f32 0.5, %v1561_v32 }
0x144a   :  { %2607 = vtanh.f32 %v1562_v37  ;;  %v1566_v10 = vmul.f32 0.5, %v1562_v37 }
0x144b   :  { %2609 = vtanh.f32 %v1561_v32 }
0x144c   :  { %2611 = vtanh.f32 %v1564_v13 }
0x144d   :  { %2613 = vtanh.f32 %v1563_v55 }
0x144e   :  { %2615 = vtanh.f32 %v1566_v10 }
0x144f   :  { %2617 = vtanh.f32 %v1565_v5 }
0x1453   :  { %v2604_v2 = vpop.eup %2603 }
0x1454   :  { %1585 = vrot.lane.b32.xlu1 %v2604_v2, %s2800_s11  ;;  %v2606_v51 = vpop.eup %2605 }
0x1457   :  { %v2608_v54 = vpop.eup %2607 }
0x1458   :  { %1649 = vrot.lane.b32.xlu1 %v2606_v51, %s2800_s11  ;;  %1587 = vrot.lane.b32.xlu0 %v2608_v54, %s2800_s11  ;;  %v2610_v11 = vpop.eup %2609 }
0x1459   :  { %v2612_v56 = vpop.eup %2611 }
0x145a   :  { %v2614_v39 = vpop.eup %2613  ;;  %v1572_v57 = vmul.f32 0.5, %v2612_v56 }
0x145b   :  { %v2616_v58 = vpop.eup %2615  ;;  %v1571_v41 = vmul.f32 0.5, %v2614_v39 }
0x145c   :  { %1651 = vrot.lane.b32.xlu0 %v2610_v11, %s2800_s11  ;;  %v1576_v42 = vadd.f32 0.5, %v1572_v57  ;;  %v1574_v8 = vmul.f32 0.5, %v2616_v58  ;;  %v2618_v19 = vpop.eup %2617 }
0x145d   :  { %v1575_v53 = vadd.f32 0.5, %v1571_v41  ;;  %v1573_v59 = vmul.f32 0.5, %v2618_v19 }
0x145e   :  { %v1578_v22 = vadd.f32 0.5, %v1574_v8  ;;  %v1581_v15 = vmul.f32 %v1576_v42, %v3257_v45 }
0x145f   :  { %v1577_v48 = vadd.f32 0.5, %v1573_v59  ;;  %v1645_v60 = vmul.f32 %v1575_v53, %v3262_v0 }
0x1460   :  { %v1582_v18 = vmul.f32 %v1578_v22, %v3264_v47 }
0x1461   :  { %v1646_v24 = vmul.f32 %v1577_v48, %v3269_v50 }
0x14c6   :  { %v1586_v38 = vpop.permute.xlu1 %1585 }
0x14c7   :  { %v1591_v52 = vmul.f32 %v1586_v38, %v1576_v42 }
0x14c9   :  { %1595 = vrot.lane.b32.xlu1 %v1591_v52, %s2804_s4 }
0x14ca   :  { %v1650_v62 = vpop.permute.xlu1 %1649  ;;  %v1588_v61 = vpop.permute.xlu0 %1587 }
0x14cb   :  { %v1655_v14 = vmul.f32 %v1650_v62, %v1575_v53  ;;  %v1592_v1 = vmul.f32 %v1588_v61, %v1578_v22 }
0x14cd   :  { %1659 = vrot.lane.b32.xlu1 %v1655_v14, %s2804_s4  ;;  %1597 = vrot.lane.b32.xlu0 %v1592_v1, %s2804_s4 }
0x14ce   :  { %v1652_v49 = vpop.permute.xlu0 %1651 }
0x14cf   :  { %v1656_v63 = vmul.f32 %v1652_v49, %v1577_v48 }
0x14d1   :  { %1661 = vrot.lane.b32.xlu0 %v1656_v63, %s2804_s4 }
0x153b   :  { %v1596_v40 = vpop.permute.xlu1 %1595 }
0x153c   :  { %v3310_v46 = vadd.f32 %v1596_v40, %v1581_v15  ;;  %v2805_v40 = vmov 0.0  }
0x153e   :  { %2619 = vtanh.f32 %v3310_v46 }
0x153f   :  { %v1660_v20 = vpop.permute.xlu1 %1659  ;;  %v1598_v12 = vpop.permute.xlu0 %1597 }
0x1540   :  { %v1665_v17 = vadd.f32 %v1660_v20, %v1645_v60  ;;  %v3315_v21 = vadd.f32 %v1598_v12, %v1582_v18 }
0x1542   :  { %2621 = vtanh.f32 %v1665_v17 }
0x1543   :  { %2623 = vtanh.f32 %v3315_v21  ;;  %v1662_v45 = vpop.permute.xlu0 %1661 }
0x1544   :  { %v1666_v29 = vadd.f32 %v1662_v45, %v1646_v24 }
0x1546   :  { %2625 = vtanh.f32 %v1666_v29 }
0x154b   :  { %v2620_v30 = vpop.eup %2619 }
0x154c   :  { %1607 = vrot.lane.b32.xlu1 %v2620_v30, %s2800_s11 }
0x154f   :  { %v2622_v31 = vpop.eup %2621 }
0x1550   :  { %v2624_v0 = vpop.eup %2623  ;;  %1671 = vrot.lane.b32.xlu1 %v2622_v31, %s2800_s11 }
0x1551   :  { %1609 = vrot.lane.b32.xlu0 %v2624_v0, %s2800_s11 }
0x1553   :  { %v2626_v47 = vpop.eup %2625 }
0x1555   :  { %1673 = vrot.lane.b32.xlu0 %v2626_v47, %s2800_s11 }
0x15be   :  { %v1608_v35 = vpop.permute.xlu1 %1607 }
0x15bf   :  { %v3323_v50 = vmul.f32 %v1608_v35, %v1576_v42 }
0x15c2   :  { %v1672_v3 = vpop.permute.xlu1 %1671 }
0x15c3   :  { %v1610_v43 = vpop.permute.xlu0 %1609  ;;  %v1677_v51 = vmul.f32 %v1672_v3, %v1575_v53 }
0x15c4   :  { %v3325_v37 = vmul.f32 %v1610_v43, %v1578_v22 }
0x15c6   :  { %v2372_v32 = vpack.i.bf16 %v3325_v37, %v3323_v50 }
0x15c7   :  { %v1674_v2 = vpop.permute.xlu0 %1673 }
0x15c8   :  { %v1678_v54 = vmul.f32 %v1674_v2, %v1577_v48  ;;  %2373 = vrot.lane.b32.xlu0 %v2372_v32, %s2800_s11 }
0x15ca   :  { %v2367_v11 = vpack.i.bf16 %v1678_v54, %v1677_v51 }
0x15cc   :  { %2368 = vrot.lane.b32.xlu1 %v2367_v11, %s2804_s4 }
0x163a   :  { %v2374_v13 = vpop.permute.xlu0 %2373 }
0x163b   :  { %v2376_v10 = vunpack.i.h.bf16 %v2374_v13  ;;  %v2375_v5 = vunpack.i.l.bf16 %v2374_v13 }
0x163e   :  { %v2369_v55 = vpop.permute.xlu1 %2368 }
0x163f   :  { %v2371_v56 = vunpack.i.h.bf16 %v2369_v55  ;;  %v2370_v39 = vunpack.i.l.bf16 %v2369_v55 }
0x1641   :  { %v1695_v57 = vsel %vm161_vm0, %v2370_v39, %v2375_v5  ;;  %v1696_v58 = vsel %vm161_vm0, %v2371_v56, %v2376_v10 }
0x1642   :  { %v1697_v42 = vpack.c.bf16 %v1696_v58, %v1695_v57 }
0x1644   :  { %2243 = vmatmul.mubr.msk.bf16.vlgmr.msra.gmra.mxu1 %vm402_vm1, %v1697_v42 }
0x1704   :  { %v1735_v41 = vpop.f32.mrf.mxu1 }
0x1706   :  { %v1736_v8 = vpop.f32.mrf.mxu1 }
0x1707   :  { %v1742_v19 = vadd.f32 %v1736_v8, %v3289_v33  ;;  %v305_v33 = vld [vmem:[%s3574_s1] sm:$0xff] }
0x1708   :  { %v1738_v38 = vpop.f32.mrf.mxu1  ;;  %vm505_vm2 = vcmp.gt.s32.totalorder %v305_v33, 0  ;;  %vm875_vm4 = vcmp.gt.s32.totalorder %v305_v33, 2  ;;  %vm690_vm6 = vcmp.gt.s32.totalorder %v305_v33, 1  ;;  %vm1060_vm8 = vcmp.gt.s32.totalorder %v305_v33, 3 }
0x1709   :  { %2627 = vtanh.f32 %v1742_v19  ;;  %v1744_v62 = vmul.f32 0.5, %v1742_v19  ;;  %v2223_v60 = vsel %vm505_vm2, 1.0, %v2805_v40  ;;  %v2229_v24 = vsel %vm875_vm4, 1.0, %v2805_v40 }
0x170a   :  { %v1739_v52 = vpop.f32.mrf.mxu1  ;;  %v2226_v30 = vsel %vm690_vm6, 1.0, %v2805_v40  ;;  %vm1245_vm10 = vcmp.gt.s32.totalorder %v305_v33, 4  ;;  %v2232_v43 = vsel %vm1060_vm8, 1.0, %v2805_v40  ;;  %vm1430_vm12 = vcmp.gt.s32.totalorder %v305_v33, 5 }
0x170b   :  { %v1743_v53 = vadd.f32 %v1739_v52, %v3296_v34  ;;  %v306_v34 = vld [vmem:[%s3574_s1 + $0x8] sm:$0xff]  ;;  %v2235_v32 = vsel %vm1245_vm10, 1.0, %v2805_v40  ;;  %vm1615_vm14 = vcmp.gt.s32.totalorder %v305_v33, 6  ;;  %v2238_v11 = vsel %vm1430_vm12, 1.0, %v2805_v40 }
0x170c   :  { %vm506_vm3 = vcmp.gt.s32.totalorder %v306_v34, 0  ;;  %vm876_vm5 = vcmp.gt.s32.totalorder %v306_v34, 2  ;;  %vm691_vm7 = vcmp.gt.s32.totalorder %v306_v34, 1  ;;  %vm1061_vm9 = vcmp.gt.s32.totalorder %v306_v34, 3 }
0x170d   :  { %2629 = vtanh.f32 %v1743_v53  ;;  %v1745_v61 = vmul.f32 0.5, %v1743_v53  ;;  %v2224_v18 = vsel %vm506_vm3, 1.0, %v2805_v40  ;;  %v2230_v29 = vsel %vm876_vm5, 1.0, %v2805_v40 }
0x170e   :  { %2631 = vtanh.f32 %v1744_v62  ;;  %v2378_v17 = vpack.i.bf16 %v2224_v18, %v2223_v60  ;;  %v2227_v31 = vsel %vm691_vm7, 1.0, %v2805_v40  ;;  %vm1246_vm11 = vcmp.gt.s32.totalorder %v306_v34, 4  ;;  %v2445_v62 = vld [vmem:[%s3578_s5 + $0x8] sm:$0xff]  }
0x170f   :  { %2633 = vtanh.f32 %v1745_v61  ;;  %v2389_v47 = vpack.i.bf16 %v2230_v29, %v2229_v24  ;;  %v2384_v35 = vpack.i.bf16 %v2227_v31, %v2226_v30  ;;  %v2233_v3 = vsel %vm1061_vm9, 1.0, %v2805_v40  ;;  %2267 = vmatprep.subr.bf16.mxu0 %v2445_v62 }
0x1710   :  { %v2236_v2 = vsel %vm1246_vm11, 1.0, %v2805_v40  ;;  %vm1431_vm13 = vcmp.gt.s32.totalorder %v306_v34, 5  ;;  %vm1616_vm15 = vcmp.gt.s32.totalorder %v306_v34, 6  ;;  %v2394_v51 = vpack.i.bf16 %v2233_v3, %v2232_v43  ;;  %2268 = vmatpush3.bf16.msra.mxu0 %v2445_v62 }
0x1711   :  { %v2399_v54 = vpack.i.bf16 %v2236_v2, %v2235_v32  ;;  %v2239_v13 = vsel %vm1431_vm13, 1.0, %v2805_v40  ;;  %v2241_v55 = vsel %vm1615_vm14, 1.0, %v2805_v40  ;;  %v2242_v10 = vsel %vm1616_vm15, 1.0, %v2805_v40 }
0x1712   :  { %vm1788_vm1 = vcmp.gt.s32.totalorder %v305_v33, 7  ;;  %vm1789_vm2 = vcmp.gt.s32.totalorder %v306_v34, 7  ;;  %v2404_v5 = vpack.i.bf16 %v2239_v13, %v2238_v11  ;;  %v2409_v56 = vpack.i.bf16 %v2242_v10, %v2241_v55 }
0x1713   :  { %v2244_v39 = vsel %vm1788_vm1, 1.0, %v2805_v40  ;;  %v2245_v57 = vsel %vm1789_vm2, 1.0, %v2805_v40 }
0x1714   :  { %v2414_v58 = vpack.i.bf16 %v2245_v57, %v2244_v39 }
0x1716   :  { %v2628_v22 = vpop.eup %2627 }
0x1717   :  { %1758 = vrot.lane.b32.xlu1 %v2628_v22, %s2800_s11 }
0x171a   :  { %v2630_v59 = vpop.eup %2629 }
0x171b   :  { %1760 = vrot.lane.b32.xlu0 %v2630_v59, %s2800_s11  ;;  %v2632_v14 = vpop.eup %2631 }
0x171c   :  { %v1748_v1 = vmul.f32 0.5, %v2632_v14  ;;  %v2634_v48 = vpop.eup %2633 }
0x171d   :  { %v1749_v63 = vmul.f32 0.5, %v2634_v48 }
0x171e   :  { %v3344_v49 = vadd.f32 0.5, %v1748_v1  ;;  %v2446_v1 = vld [vmem:[%s3578_s5] sm:$0xff]  }
0x171f   :  { %v3348_v12 = vadd.f32 0.5, %v1749_v63  ;;  %2269 = vmatprep.subr.bf16.mxu0 %v2446_v1 }
0x1720   :  { %v1754_v42 = vmul.f32 %v3344_v49, %v3310_v46  ;;  %2270 = vmatpush3.bf16.msra.mxu0 %v2446_v1 }
0x1721   :  { %v1755_v19 = vmul.f32 %v3348_v12, %v3315_v21 }
0x1789   :  { %v1759_v15 = vpop.permute.xlu1 %1758 }
0x178a   :  { %v1764_v20 = vmul.f32 %v1759_v15, %v3344_v49 }
0x178c   :  { %1768 = vrot.lane.b32.xlu1 %v1764_v20, %s2804_s4 }
0x178d   :  { %v1761_v45 = vpop.permute.xlu0 %1760 }
0x178e   :  { %v1765_v0 = vmul.f32 %v1761_v45, %v3348_v12 }
0x1790   :  { %2379 = vperm.xlu1 %2377, %v2378_v17   ;;  %1770 = vrot.lane.b32.xlu0 %v1765_v0, %s2804_s4 }
0x1794   :  { %2390 = vperm.xlu1 %2377, %v2389_v47   ;;  %2385 = vperm.xlu0 %2383, %v2384_v35  }
0x1798   :  { %2395 = vperm.xlu1 %2377, %v2394_v51   ;;  %2400 = vperm.xlu0 %2383, %v2399_v54  }
0x179c   :  { %2405 = vperm.xlu1 %2377, %v2404_v5   ;;  %2410 = vperm.xlu0 %2383, %v2409_v56  }
0x17a0   :  { %2415 = vperm.xlu1 %2377, %v2414_v58  }
0x17fe   :  { %v1769_v41 = vpop.permute.xlu1 %1768 }
0x17ff   :  { %v1774_v8 = vadd.f32 %v1769_v41, %v1754_v42 }
0x1801   :  { %2635 = vtanh.f32 %v1774_v8 }
0x1802   :  { %v1771_v38 = vpop.permute.xlu0 %1770 }
0x1803   :  { %v1775_v52 = vadd.f32 %v1771_v38, %v1755_v19 }
0x1805   :  { %2637 = vtanh.f32 %v1775_v52 }
0x180b   :  { %v2380_v53 = vpop.permute.xlu1 %2379 }
0x180c   :  { %v2381_v22 = vunpack.i.l.bf16 %v2380_v53  ;;  %v2382_v14 = vunpack.i.h.bf16 %v2380_v53 }
0x180e   :  { %v2636_v59 = vpop.eup %2635  ;;  %v521_v33 = vmul.f32 %v2381_v22, %v3000_v27  ;;  %v522_v48 = vmul.f32 %v2382_v14, %v3002_v28 }
0x180f   :  { %1780 = vrot.lane.b32.xlu0 %v2636_v59, %s2800_s11  ;;  %v2386_v61 = vpop.permute.xlu0 %2385  ;;  %v2391_v46 = vpop.permute.xlu1 %2390 }
0x1810   :  { %v2387_v34 = vunpack.i.l.bf16 %v2386_v61  ;;  %v2392_v63 = vunpack.i.l.bf16 %v2391_v46  ;;  %v2388_v15 = vunpack.i.h.bf16 %v2386_v61  ;;  %v2393_v60 = vunpack.i.h.bf16 %v2391_v46 }
0x1812   :  { %v2638_v21 = vpop.eup %2637  ;;  %v706_v40 = vmul.f32 %v2387_v34, %v3054_v9  ;;  %v891_v18 = vmul.f32 %v2392_v63, %v3108_v25  ;;  %v707_v20 = vmul.f32 %v2388_v15, %v3056_v36  ;;  %v892_v28 = vmul.f32 %v2393_v60, %v3110_v26 }
0x1813   :  { %525 = vrot.lane.b32.xlu0 %v521_v33, %s2804_s4  ;;  %1782 = vrot.lane.b32.xlu1 %v2638_v21, %s2800_s11  ;;  %v2396_v27 = vpop.permute.xlu1 %2395  ;;  %v2401_v24 = vpop.permute.xlu0 %2400 }
0x1814   :  { %v2397_v17 = vunpack.i.l.bf16 %v2396_v27  ;;  %v2398_v9 = vunpack.i.h.bf16 %v2396_v27  ;;  %v2402_v29 = vunpack.i.l.bf16 %v2401_v24  ;;  %v2403_v36 = vunpack.i.h.bf16 %v2401_v24 }
0x1816   :  { %v1076_v45 = vmul.f32 %v2397_v17, %v3162_v4  ;;  %v1077_v25 = vmul.f32 %v2398_v9, %v3164_v16  ;;  %v1261_v31 = vmul.f32 %v2402_v29, %v3223_v23  ;;  %v1262_v26 = vmul.f32 %v2403_v36, %v3225_v7 }
0x1817   :  { %710 = vrot.lane.b32.xlu0 %v706_v40, %s2804_s4  ;;  %527 = vrot.lane.b32.xlu1 %v522_v48, %s2804_s4  ;;  %v2406_v30 = vpop.permute.xlu1 %2405  ;;  %v2411_v47 = vpop.permute.xlu0 %2410 }
0x1818   :  { %v2407_v0 = vunpack.i.l.bf16 %v2406_v30  ;;  %v2408_v4 = vunpack.i.h.bf16 %v2406_v30  ;;  %v2412_v43 = vunpack.i.l.bf16 %v2411_v47  ;;  %v2413_v3 = vunpack.i.h.bf16 %v2411_v47  ;;  %v2246_v30 = vld [vmem:[%s3579_s6] ss:$0 sm:$0xff]  ;;  %s2806_s6 = smov [#allocation9]  }
0x1819   :  { %s2181_s29 = sshll.u32 %s2806_s6, 4  ;;  %s2182_s29 = int_to_ptr.vmem [resolvable:$true] %s2181_s29 }
0x181a   :  { %v1446_v35 = vmul.f32 %v2407_v0, %v3276_v44  ;;  %v1447_v16 = vmul.f32 %v2408_v4, %v3278_v6  ;;  %v1631_v23 = vmul.f32 %v2412_v43, %v3323_v50  ;;  %v1632_v32 = vmul.f32 %v2413_v3, %v3325_v37  ;;  %s2770_s30 = scalar_lea.vmem %s2182_s29, 2048  ;;  %p2775_p2 = scmp.lt.s32.totalorder %s2182_s29, %s2182_s29 }
0x181b   :  { %895 = vrot.lane.b32.xlu0 %v891_v18, %s2804_s4  ;;  %712 = vrot.lane.b32.xlu1 %v707_v20, %s2804_s4  ;;  %v2416_v7 = vpop.permute.xlu1 %2415  ;;  %p2771_p1 = scmp.ne.s32.totalorder %s2182_s29, %s2770_s30  ;;  %p2776_p3 = scmp.lt.s32.totalorder %s2770_s30, %s2770_s30 }
0x181c   :  { %v2417_v2 = vunpack.i.l.bf16 %v2416_v7  ;;  %v2418_v6 = vunpack.i.h.bf16 %v2416_v7 }
0x181d   :  { %p2777_p4 = por %p2776_p3, %p2775_p2 }
0x181f   :  { %1080 = vrot.lane.b32.xlu0 %v1076_v45, %s2804_s4  ;;  %897 = vrot.lane.b32.xlu1 %v892_v28, %s2804_s4  ;;  %p2778_p5 = pnand %p2777_p4, %p2771_p1 }
0x1823   :  { %1265 = vrot.lane.b32.xlu0 %v1261_v31, %s2804_s4  ;;  %1082 = vrot.lane.b32.xlu1 %v1077_v25, %s2804_s4 }
0x1827   :  { %1450 = vrot.lane.b32.xlu0 %v1446_v35, %s2804_s4  ;;  %1267 = vrot.lane.b32.xlu1 %v1262_v26, %s2804_s4 }
0x182b   :  { %1635 = vrot.lane.b32.xlu0 %v1631_v23, %s2804_s4  ;;  %1452 = vrot.lane.b32.xlu1 %v1447_v16, %s2804_s4 }
0x182f   :  { %1637 = vrot.lane.b32.xlu1 %v1632_v32, %s2804_s4 }
0x1881   :  { %v1781_v44 = vpop.permute.xlu0 %1780 }
0x1882   :  { %v1786_v51 = vmul.f32 %v1781_v44, %v3344_v49 }
0x1884   :  { %v1804_v54 = vmul.f32 %v2417_v2, %v1786_v51 }
0x1885   :  { %v526_v11 = vpop.permute.xlu0 %525  ;;  %v1783_v13 = vpop.permute.xlu1 %1782 }
0x1886   :  { %531 = vst.msk [vmem:[#allocation2] sm:$0xff] %vm161_vm0, %v526_v11  ;;  %v1787_v50 = vmul.f32 %v1783_v13, %v3348_v12  ;;  %1808 = vrot.lane.b32.xlu0 %v1804_v54, %s2804_s4 }
0x1888   :  { %v1805_v55 = vmul.f32 %v2418_v6, %v1787_v50 }
0x1889   :  { %v711_v10 = vpop.permute.xlu0 %710  ;;  %v528_v37 = vpop.permute.xlu1 %527 }
0x188a   :  { %716 = vst.msk [vmem:[#allocation2 + $0x10] sm:$0xff] %vm161_vm0, %v711_v10  ;;  %532 = vst.msk [vmem:[#allocation2 + $0x8] sm:$0xff] %vm161_vm0, %v528_v37  ;;  %1810 = vrot.lane.b32.xlu1 %v1805_v55, %s2804_s4 }
0x188d   :  { %v896_v49 = vpop.permute.xlu0 %895  ;;  %v713_v5 = vpop.permute.xlu1 %712  ;;  %v1816_v12 = vld [vmem:[#allocation2] sm:$0xff] }
0x188e   :  { %901 = vst.msk [vmem:[#allocation2 + $0x20] sm:$0xff] %vm161_vm0, %v896_v49  ;;  %717 = vst.msk [vmem:[#allocation2 + $0x18] sm:$0xff] %vm161_vm0, %v713_v5 }
0x1891   :  { %v1081_v56 = vpop.permute.xlu0 %1080  ;;  %v898_v39 = vpop.permute.xlu1 %897  ;;  %v1817_v57 = vld [vmem:[#allocation2 + $0x8] sm:$0xff]  ;;  %v1818_v8 = vld [vmem:[#allocation2 + $0x10] sm:$0xff] }
0x1892   :  { %1086 = vst.msk [vmem:[#allocation2 + $0x30] sm:$0xff] %vm161_vm0, %v1081_v56  ;;  %902 = vst.msk [vmem:[#allocation2 + $0x28] sm:$0xff] %vm161_vm0, %v898_v39  ;;  %v1832_v58 = vpack.c.bf16 %v1817_v57, %v1816_v12 }
0x1894   :  { %2271 = vmatprep.mubr.msk.bf16.mxu0 %vm161_vm0, %v1832_v58 }
0x1895   :  { %v1266_v42 = vpop.permute.xlu0 %1265  ;;  %v1083_v41 = vpop.permute.xlu1 %1082  ;;  %v1819_v19 = vld [vmem:[#allocation2 + $0x18] sm:$0xff]  ;;  %v1820_v22 = vld [vmem:[#allocation2 + $0x20] sm:$0xff] }
0x1896   :  { %1271 = vst.msk [vmem:[#allocation2 + $0x40] sm:$0xff] %vm161_vm0, %v1266_v42  ;;  %1087 = vst.msk [vmem:[#allocation2 + $0x38] sm:$0xff] %vm161_vm0, %v1083_v41  ;;  %v1833_v38 = vpack.c.bf16 %v1819_v19, %v1818_v8 }
0x1898   :  { %2272 = vmatmul.mubr.msk.bf16.vlgmr.msra.gmra.mxu0 %vm161_vm0, %v1833_v38 }
0x1899   :  { %v1451_v52 = vpop.permute.xlu0 %1450  ;;  %v1268_v53 = vpop.permute.xlu1 %1267  ;;  %v1821_v59 = vld [vmem:[#allocation2 + $0x28] sm:$0xff]  ;;  %v1822_v14 = vld [vmem:[#allocation2 + $0x30] sm:$0xff] }
0x189a   :  { %1456 = vst.msk [vmem:[#allocation2 + $0x50] sm:$0xff] %vm161_vm0, %v1451_v52  ;;  %1272 = vst.msk [vmem:[#allocation2 + $0x48] sm:$0xff] %vm161_vm0, %v1268_v53  ;;  %v1834_v62 = vpack.c.bf16 %v1821_v59, %v1820_v22 }
0x189c   :  { %2275 = vmatprep.mubr.msk.bf16.mxu0 %vm161_vm0, %v1834_v62 }
0x189d   :  { %v1636_v61 = vpop.permute.xlu0 %1635  ;;  %v1453_v46 = vpop.permute.xlu1 %1452  ;;  %v1823_v33 = vld [vmem:[#allocation2 + $0x38] sm:$0xff]  ;;  %v1824_v1 = vld [vmem:[#allocation2 + $0x40] sm:$0xff] }
0x189e   :  { %1641 = vst.msk [vmem:[#allocation2 + $0x60] sm:$0xff] %vm161_vm0, %v1636_v61  ;;  %1457 = vst.msk [vmem:[#allocation2 + $0x58] sm:$0xff] %vm161_vm0, %v1453_v46  ;;  %v1835_v34 = vpack.c.bf16 %v1823_v33, %v1822_v14 }
0x18a0   :  { %2276 = vmatmul.mubr.msk.bf16.gmra.mxu0 %vm161_vm0, %v1835_v34 }
0x18a1   :  { %v1638_v21 = vpop.permute.xlu1 %1637  ;;  %v1825_v48 = vld [vmem:[#allocation2 + $0x48] sm:$0xff]  ;;  %v1826_v15 = vld [vmem:[#allocation2 + $0x50] sm:$0xff] }
0x18a2   :  { %1642 = vst.msk [vmem:[#allocation2 + $0x68] sm:$0xff] %vm161_vm0, %v1638_v21  ;;  %v1836_v63 = vpack.c.bf16 %v1825_v48, %v1824_v1 }
0x18a4   :  { %2279 = vmatprep.mubr.msk.bf16.mxu0 %vm161_vm0, %v1836_v63 }
0x18a5   :  { %v1827_v40 = vld [vmem:[#allocation2 + $0x58] sm:$0xff]  ;;  %v1828_v60 = vld [vmem:[#allocation2 + $0x60] sm:$0xff] }
0x18a6   :  { %v1837_v27 = vpack.c.bf16 %v1827_v40, %v1826_v15 }
0x18a8   :  { %2280 = vmatmul.mubr.msk.bf16.gmra.mxu0 %vm161_vm0, %v1837_v27 }
0x18a9   :  { %v1829_v18 = vld [vmem:[#allocation2 + $0x68] sm:$0xff] }
0x18aa   :  { %v1838_v20 = vpack.c.bf16 %v1829_v18, %v1828_v60 }
0x18ac   :  { %2283 = vmatprep.mubr.msk.bf16.mxu0 %vm161_vm0, %v1838_v20 }
0x18f8   :  { %v1809_v17 = vpop.permute.xlu0 %1808 }
0x18f9   :  { %1814 = vst.msk [vmem:[#allocation2 + $0x70] sm:$0xff] %vm161_vm0, %v1809_v17 }
0x18fc   :  { %v1811_v24 = vpop.permute.xlu1 %1810 }
0x18fd   :  { %1815 = vst.msk [vmem:[#allocation2 + $0x78] sm:$0xff] %vm161_vm0, %v1811_v24 }
0x1900   :  { %v1830_v28 = vld [vmem:[#allocation2 + $0x70] sm:$0xff] }
0x1904   :  { %v1831_v9 = vld [vmem:[#allocation2 + $0x78] sm:$0xff] }
0x1905   :  { %v1839_v45 = vpack.c.bf16 %v1831_v9, %v1830_v28 }
0x1907   :  { %2284 = vmatmul.mubr.msk.bf16.gmra.mxu0 %vm161_vm0, %v1839_v45 }
0x1958   :  { %v2273_v29 = vpop.f32.mrf.mxu0 }
0x1959   :  { %v3426_v47 = vadd.f32 %v2273_v29, %v2246_v30 }
0x195a   :  { %v1921_v25 = vpop.f32.mrf.mxu0 }
0x195b   :  { %v3423_v36 = vadd.f32 %v2246_v30, %v1921_v25 }
0x195c   :  { %v2274_v31 = vpop.f32.mrf.mxu0 }
0x195d   :  { %1984 = vmax.xlane.f32.xlu0 %v3423_v36  ;;  %v3432_v43 = vadd.f32 %v2274_v31, %v2246_v30 }
0x195e   :  { %v1924_v0 = vpop.f32.mrf.mxu0 }
0x195f   :  { %v3428_v26 = vadd.f32 %v2246_v30, %v1924_v0 }
0x1960   :  { %v2277_v4 = vpop.f32.mrf.mxu0 }
0x1961   :  { %1986 = vmax.xlane.f32.xlu1 %v3428_v26  ;;  %1988 = vmax.xlane.f32.xlu0 %v3426_v47  ;;  %v3438_v32 = vadd.f32 %v2277_v4, %v2246_v30 }
0x1962   :  { %v1937_v35 = vpop.f32.mrf.mxu0 }
0x1963   :  { %v3434_v16 = vadd.f32 %v2246_v30, %v1937_v35 }
0x1964   :  { %v2278_v3 = vpop.f32.mrf.mxu0 }
0x1965   :  { %1990 = vmax.xlane.f32.xlu0 %v3432_v43  ;;  %1992 = vmax.xlane.f32.xlu1 %v3434_v16  ;;  %v3444_v51 = vadd.f32 %v2278_v3, %v2246_v30 }
0x1966   :  { %v1940_v23 = vpop.f32.mrf.mxu0 }
0x1967   :  { %v3440_v7 = vadd.f32 %v2246_v30, %v1940_v23 }
0x1968   :  { %v2281_v44 = vpop.f32.mrf.mxu0 }
0x1969   :  { %1994 = vmax.xlane.f32.xlu0 %v3440_v7  ;;  %1996 = vmax.xlane.f32.xlu1 %v3438_v32  ;;  %v3450_v6 = vadd.f32 %v2281_v44, %v2246_v30 }
0x196a   :  { %v1953_v2 = vpop.f32.mrf.mxu0 }
0x196b   :  { %v3446_v54 = vadd.f32 %v2246_v30, %v1953_v2 }
0x196c   :  { %v2282_v11 = vpop.f32.mrf.mxu0 }
0x196d   :  { %1998 = vmax.xlane.f32.xlu0 %v3444_v51  ;;  %2000 = vmax.xlane.f32.xlu1 %v3446_v54  ;;  %v3456_v55 = vadd.f32 %v2282_v11, %v2246_v30 }
0x196e   :  { %v1956_v13 = vpop.f32.mrf.mxu0 }
0x196f   :  { %v3452_v50 = vadd.f32 %v2246_v30, %v1956_v13 }
0x1971   :  { %2002 = vmax.xlane.f32.xlu0 %v3452_v50  ;;  %2004 = vmax.xlane.f32.xlu1 %v3450_v6 }
0x1975   :  { %2006 = vmax.xlane.f32.xlu0 %v3456_v55 }
0x19c7   :  { %v2285_v10 = vpop.f32.mrf.mxu0 }
0x19c8   :  { %v3462_v39 = vadd.f32 %v2285_v10, %v2246_v30 }
0x19c9   :  { %v1969_v37 = vpop.f32.mrf.mxu0 }
0x19ca   :  { %v3459_v49 = vadd.f32 %v2246_v30, %v1969_v37 }
0x19cb   :  { %v2286_v5 = vpop.f32.mrf.mxu0 }
0x19cc   :  { %2008 = vmax.xlane.f32.xlu1 %v3459_v49  ;;  %v3468_v57 = vadd.f32 %v2286_v5, %v2246_v30 }
0x19cd   :  { %v1972_v56 = vpop.f32.mrf.mxu0 }
0x19ce   :  { %v3464_v12 = vadd.f32 %v2246_v30, %v1972_v56 }
0x19d0   :  { %2010 = vmax.xlane.f32.xlu0 %v3464_v12  ;;  %2012 = vmax.xlane.f32.xlu1 %v3462_v39 }
0x19d4   :  { %2014 = vmax.xlane.f32.xlu0 %v3468_v57 }
0x19e6   :  { %v3471_v58 = vpop.xlane.xlu0 %1984 }
0x19e7   :  { %v2016_v42 = vsub.f32 %v3423_v36, %v3471_v58 }
0x19e9   :  { %v2032_v41 = vmul.f32 1.442695, %v2016_v42 }
0x19ea   :  { %v3475_v8 = vpop.xlane.xlu0 %1988  ;;  %v3477_v19 = vpop.xlane.xlu1 %1986 }
0x19eb   :  { %2639 = vpow2.f32 %v2032_v41  ;;  %v2018_v38 = vsub.f32 %v3426_v47, %v3475_v8  ;;  %v2017_v52 = vsub.f32 %v3428_v26, %v3477_v19 }
0x19ed   :  { %v2036_v53 = vmul.f32 1.442695, %v2018_v38  ;;  %v2034_v22 = vmul.f32 1.442695, %v2017_v52 }
0x19ee   :  { %v3483_v59 = vpop.xlane.xlu0 %1990  ;;  %v3485_v62 = vpop.xlane.xlu1 %1992 }
0x19ef   :  { %2641 = vpow2.f32 %v2036_v53  ;;  %v2019_v61 = vsub.f32 %v3432_v43, %v3483_v59  ;;  %v2020_v46 = vsub.f32 %v3434_v16, %v3485_v62 }
0x19f0   :  { %2643 = vpow2.f32 %v2034_v22 }
0x19f1   :  { %v2038_v14 = vmul.f32 1.442695, %v2019_v61  ;;  %v2040_v33 = vmul.f32 1.442695, %v2020_v46 }
0x19f2   :  { %v3491_v34 = vpop.xlane.xlu0 %1994  ;;  %v3493_v21 = vpop.xlane.xlu1 %1996 }
0x19f3   :  { %2645 = vpow2.f32 %v2038_v14  ;;  %v2021_v1 = vsub.f32 %v3440_v7, %v3491_v34  ;;  %v2022_v48 = vsub.f32 %v3438_v32, %v3493_v21 }
0x19f4   :  { %2647 = vpow2.f32 %v2040_v33 }
0x19f5   :  { %v2042_v63 = vmul.f32 1.442695, %v2021_v1  ;;  %v2044_v15 = vmul.f32 1.442695, %v2022_v48 }
0x19f6   :  { %v3499_v40 = vpop.xlane.xlu0 %1998  ;;  %v3501_v27 = vpop.xlane.xlu1 %2000 }
0x19f7   :  { %2649 = vpow2.f32 %v2042_v63  ;;  %v2023_v60 = vsub.f32 %v3444_v51, %v3499_v40  ;;  %v2024_v18 = vsub.f32 %v3446_v54, %v3501_v27 }
0x19f8   :  { %v2640_v20 = vpop.eup %2639  ;;  %2651 = vpow2.f32 %v2044_v15 }
0x19f9   :  { %v2046_v17 = vmul.f32 1.442695, %v2023_v60  ;;  %v2048_v24 = vmul.f32 1.442695, %v2024_v18  ;;  %2064 = vadd.xlane.f32.xlu1 %v2640_v20 }
0x19fa   :  { %v3507_v28 = vpop.xlane.xlu0 %2002  ;;  %v3509_v9 = vpop.xlane.xlu1 %2004 }
0x19fb   :  { %2653 = vpow2.f32 %v2046_v17  ;;  %v2025_v45 = vsub.f32 %v3452_v50, %v3507_v28  ;;  %v2026_v29 = vsub.f32 %v3450_v6, %v3509_v9 }
0x19fc   :  { %v2642_v30 = vpop.eup %2641  ;;  %2655 = vpow2.f32 %v2048_v24 }
0x19fd   :  { %v2644_v25 = vpop.eup %2643  ;;  %v2050_v31 = vmul.f32 1.442695, %v2025_v45  ;;  %v2052_v0 = vmul.f32 1.442695, %v2026_v29  ;;  %2068 = vadd.xlane.f32.xlu1 %v2642_v30 }
0x19fe   :  { %2066 = vadd.xlane.f32.xlu0 %v2644_v25  ;;  %v3515_v4 = vpop.xlane.xlu0 %2006 }
0x19ff   :  { %2657 = vpow2.f32 %v2050_v31  ;;  %v2027_v35 = vsub.f32 %v3456_v55, %v3515_v4 }
0x1a00   :  { %v2646_v3 = vpop.eup %2645  ;;  %2659 = vpow2.f32 %v2052_v0 }
0x1a01   :  { %v2648_v23 = vpop.eup %2647  ;;  %v2054_v44 = vmul.f32 1.442695, %v2027_v35 }
0x1a02   :  { %2070 = vadd.xlane.f32.xlu0 %v2646_v3  ;;  %2072 = vadd.xlane.f32.xlu1 %v2648_v23 }
0x1a03   :  { %2661 = vpow2.f32 %v2054_v44 }
0x1a04   :  { %v2650_v2 = vpop.eup %2649 }
0x1a05   :  { %v2652_v11 = vpop.eup %2651 }
0x1a06   :  { %2074 = vadd.xlane.f32.xlu0 %v2650_v2  ;;  %2076 = vadd.xlane.f32.xlu1 %v2652_v11 }
0x1a08   :  { %v2654_v13 = vpop.eup %2653 }
0x1a09   :  { %v2656_v10 = vpop.eup %2655 }
0x1a0a   :  { %2078 = vadd.xlane.f32.xlu0 %v2654_v13  ;;  %2080 = vadd.xlane.f32.xlu1 %v2656_v10 }
0x1a0c   :  { %v2658_v37 = vpop.eup %2657 }
0x1a0d   :  { %v2660_v5 = vpop.eup %2659 }
0x1a0e   :  { %2082 = vadd.xlane.f32.xlu0 %v2658_v37  ;;  %2084 = vadd.xlane.f32.xlu1 %v2660_v5 }
0x1a10   :  { %v2662_v56 = vpop.eup %2661 }
0x1a12   :  { %2086 = vadd.xlane.f32.xlu0 %v2662_v56 }
0x1a55   :  { %v3519_v42 = vpop.xlane.xlu1 %2008 }
0x1a56   :  { %v2028_v41 = vsub.f32 %v3459_v49, %v3519_v42 }
0x1a58   :  { %v2056_v38 = vmul.f32 1.442695, %v2028_v41 }
0x1a59   :  { %v3523_v52 = vpop.xlane.xlu0 %2010  ;;  %v3525_v53 = vpop.xlane.xlu1 %2012 }
0x1a5a   :  { %2663 = vpow2.f32 %v2056_v38  ;;  %v2029_v22 = vsub.f32 %v3464_v12, %v3523_v52  ;;  %v2030_v61 = vsub.f32 %v3462_v39, %v3525_v53 }
0x1a5c   :  { %v2058_v46 = vmul.f32 1.442695, %v2029_v22  ;;  %v2060_v14 = vmul.f32 1.442695, %v2030_v61 }
0x1a5d   :  { %v3531_v33 = vpop.xlane.xlu0 %2014 }
0x1a5e   :  { %2665 = vpow2.f32 %v2058_v46  ;;  %v2031_v1 = vsub.f32 %v3468_v57, %v3531_v33 }
0x1a5f   :  { %2667 = vpow2.f32 %v2060_v14 }
0x1a60   :  { %v2062_v48 = vmul.f32 1.442695, %v2031_v1 }
0x1a62   :  { %2669 = vpow2.f32 %v2062_v48 }
0x1a67   :  { %v2664_v63 = vpop.eup %2663 }
0x1a68   :  { %2088 = vadd.xlane.f32.xlu1 %v2664_v63 }
0x1a6b   :  { %v2666_v15 = vpop.eup %2665 }
0x1a6c   :  { %v2668_v60 = vpop.eup %2667  ;;  %2090 = vadd.xlane.f32.xlu0 %v2666_v15 }
0x1a6d   :  { %2092 = vadd.xlane.f32.xlu1 %v2668_v60 }
0x1a6f   :  { %v2670_v18 = vpop.eup %2669 }
0x1a70   :  { %2094 = vadd.xlane.f32.xlu0 %v2670_v18 }
0x1a82   :  { %v2065_v20 = vpop.xlane.xlu1 %2064 }
0x1a83   :  { %2671 = vlog2.f32 %v2065_v20 }
0x1a86   :  { %v2069_v17 = vpop.xlane.xlu1 %2068 }
0x1a87   :  { %v2067_v24 = vpop.xlane.xlu0 %2066  ;;  %2673 = vlog2.f32 %v2069_v17 }
0x1a88   :  { %2675 = vlog2.f32 %v2067_v24 }
0x1a8b   :  { %v2071_v45 = vpop.xlane.xlu0 %2070  ;;  %v2073_v29 = vpop.xlane.xlu1 %2072 }
0x1a8c   :  { %2677 = vlog2.f32 %v2071_v45 }
0x1a8d   :  { %2679 = vlog2.f32 %v2073_v29 }
0x1a8f   :  { %v2075_v30 = vpop.xlane.xlu0 %2074  ;;  %v2077_v25 = vpop.xlane.xlu1 %2076 }
0x1a90   :  { %v2672_v31 = vpop.eup %2671  ;;  %2681 = vlog2.f32 %v2075_v30 }
0x1a91   :  { %v2097_v0 = vmul.f32 0.6931472, %v2672_v31  ;;  %2683 = vlog2.f32 %v2077_v25 }
0x1a93   :  { %v2128_v35 = vadd.f32 %v2097_v0, %v3471_v58  ;;  %v2079_v3 = vpop.xlane.xlu0 %2078  ;;  %v2081_v23 = vpop.xlane.xlu1 %2080 }
0x1a94   :  { %v2674_v44 = vpop.eup %2673  ;;  %2685 = vlog2.f32 %v2079_v3 }
0x1a95   :  { %v2676_v2 = vpop.eup %2675  ;;  %v2144_v11 = vsub.f32 %v3423_v36, %v2128_v35  ;;  %v2101_v13 = vmul.f32 0.6931472, %v2674_v44  ;;  %2687 = vlog2.f32 %v2081_v23 }
0x1a96   :  { %v2099_v10 = vmul.f32 0.6931472, %v2676_v2 }
0x1a97   :  { %2160 = vst [vmem:[#allocation9] sm:$0xff] %v2144_v11  ;;  %v2130_v37 = vadd.f32 %v2101_v13, %v3475_v8  ;;  %v2083_v5 = vpop.xlane.xlu0 %2082  ;;  %v2085_v56 = vpop.xlane.xlu1 %2084 }
0x1a98   :  { %v2129_v41 = vadd.f32 %v2099_v10, %v3477_v19  ;;  %2689 = vlog2.f32 %v2083_v5 }
0x1a99   :  { %v2678_v38 = vpop.eup %2677  ;;  %v2146_v58 = vsub.f32 %v3426_v47, %v2130_v37  ;;  %2691 = vlog2.f32 %v2085_v56 }
0x1a9a   :  { %v2680_v22 = vpop.eup %2679  ;;  %v2145_v61 = vsub.f32 %v3428_v26, %v2129_v41  ;;  %v2103_v46 = vmul.f32 0.6931472, %v2678_v38 }
0x1a9b   :  { %2162 = vst [vmem:[#allocation9 + $0x10] sm:$0xff] %v2146_v58  ;;  %v2105_v36 = vmul.f32 0.6931472, %v2680_v22  ;;  %v2087_v14 = vpop.xlane.xlu0 %2086 }
0x1a9c   :  { %2161 = vst [vmem:[#allocation9 + $0x8] sm:$0xff] %v2145_v61  ;;  %v2131_v1 = vadd.f32 %v2103_v46, %v3483_v59  ;;  %2693 = vlog2.f32 %v2087_v14 }
0x1a9d   :  { %v2682_v8 = vpop.eup %2681  ;;  %v2132_v48 = vadd.f32 %v2105_v36, %v3485_v62 }
0x1a9e   :  { %v2684_v19 = vpop.eup %2683  ;;  %v2147_v63 = vsub.f32 %v3432_v43, %v2131_v1  ;;  %v2107_v15 = vmul.f32 0.6931472, %v2682_v8 }
0x1a9f   :  { %v2148_v47 = vsub.f32 %v3434_v16, %v2132_v48  ;;  %v2109_v60 = vmul.f32 0.6931472, %v2684_v19 }
0x1aa0   :  { %2163 = vst [vmem:[#allocation9 + $0x18] sm:$0xff] %v2147_v63  ;;  %v2133_v26 = vadd.f32 %v2107_v15, %v3491_v34 }
0x1aa1   :  { %v2686_v18 = vpop.eup %2685  ;;  %2164 = vst [vmem:[#allocation9 + $0x20] sm:$0xff] %v2148_v47  ;;  %v2134_v20 = vadd.f32 %v2109_v60, %v3493_v21 }
0x1aa2   :  { %v2688_v17 = vpop.eup %2687  ;;  %v2149_v59 = vsub.f32 %v3440_v7, %v2133_v26  ;;  %v2111_v24 = vmul.f32 0.6931472, %v2686_v18 }
0x1aa3   :  { %v2150_v62 = vsub.f32 %v3438_v32, %v2134_v20  ;;  %v2113_v45 = vmul.f32 0.6931472, %v2688_v17 }
0x1aa4   :  { %2165 = vst [vmem:[#allocation9 + $0x28] sm:$0xff] %v2149_v59  ;;  %v2135_v43 = vadd.f32 %v2111_v24, %v3499_v40 }
0x1aa5   :  { %v2690_v29 = vpop.eup %2689  ;;  %2166 = vst [vmem:[#allocation9 + $0x30] sm:$0xff] %v2150_v62  ;;  %v2136_v16 = vadd.f32 %v2113_v45, %v3501_v27 }
0x1aa6   :  { %v2692_v30 = vpop.eup %2691  ;;  %v2151_v34 = vsub.f32 %v3444_v51, %v2135_v43  ;;  %v2115_v25 = vmul.f32 0.6931472, %v2690_v29 }
0x1aa7   :  { %v2152_v21 = vsub.f32 %v3446_v54, %v2136_v16  ;;  %v2117_v31 = vmul.f32 0.6931472, %v2692_v30 }
0x1aa8   :  { %2167 = vst [vmem:[#allocation9 + $0x38] sm:$0xff] %v2151_v34  ;;  %v2137_v7 = vadd.f32 %v2115_v25, %v3507_v28 }
0x1aa9   :  { %v2694_v0 = vpop.eup %2693  ;;  %2168 = vst [vmem:[#allocation9 + $0x40] sm:$0xff] %v2152_v21  ;;  %v2138_v32 = vadd.f32 %v2117_v31, %v3509_v9 }
0x1aaa   :  { %v2153_v40 = vsub.f32 %v3452_v50, %v2137_v7  ;;  %v2119_v35 = vmul.f32 0.6931472, %v2694_v0 }
0x1aab   :  { %v2154_v3 = vsub.f32 %v3450_v6, %v2138_v32 }
0x1aac   :  { %2169 = vst [vmem:[#allocation9 + $0x48] sm:$0xff] %v2153_v40  ;;  %v2139_v27 = vadd.f32 %v2119_v35, %v3515_v4 }
0x1aad   :  { %2170 = vst [vmem:[#allocation9 + $0x50] sm:$0xff] %v2154_v3 }
0x1aae   :  { %v2155_v51 = vsub.f32 %v3456_v55, %v2139_v27 }
0x1ab0   :  { %2171 = vst [vmem:[#allocation9 + $0x58] sm:$0xff] %v2155_v51 }
0x1af1   :  { %v2089_v54 = vpop.xlane.xlu1 %2088 }
0x1af2   :  { %2695 = vlog2.f32 %v2089_v54 }
0x1af5   :  { %v2091_v23 = vpop.xlane.xlu0 %2090 }
0x1af6   :  { %2697 = vlog2.f32 %v2091_v23  ;;  %v2093_v28 = vpop.xlane.xlu1 %2092 }
0x1af7   :  { %2699 = vlog2.f32 %v2093_v28 }
0x1af9   :  { %v2095_v44 = vpop.xlane.xlu0 %2094 }
0x1afa   :  { %2701 = vlog2.f32 %v2095_v44 }
0x1aff   :  { %v2696_v9 = vpop.eup %2695 }
0x1b00   :  { %v2121_v50 = vmul.f32 0.6931472, %v2696_v9 }
0x1b02   :  { %v2140_v2 = vadd.f32 %v2121_v50, %v3519_v42 }
0x1b03   :  { %v2698_v6 = vpop.eup %2697 }
0x1b04   :  { %v2700_v11 = vpop.eup %2699  ;;  %v2156_v4 = vsub.f32 %v3459_v49, %v2140_v2  ;;  %v2123_v13 = vmul.f32 0.6931472, %v2698_v6 }
0x1b05   :  { %v2125_v10 = vmul.f32 0.6931472, %v2700_v11 }
0x1b06   :  { %2172 = vst [vmem:[#allocation9 + $0x60] sm:$0xff] %v2156_v4  ;;  %v2141_v55 = vadd.f32 %v2123_v13, %v3523_v52 }
0x1b07   :  { %v2702_v37 = vpop.eup %2701  ;;  %v2142_v5 = vadd.f32 %v2125_v10, %v3525_v53 }
0x1b08   :  { %v2157_v56 = vsub.f32 %v3464_v12, %v2141_v55  ;;  %v2127_v41 = vmul.f32 0.6931472, %v2702_v37 }
0x1b09   :  { %v2158_v38 = vsub.f32 %v3462_v39, %v2142_v5 }
0x1b0a   :  { %2173 = vst [vmem:[#allocation9 + $0x68] sm:$0xff] %v2157_v56  ;;  %v2143_v42 = vadd.f32 %v2127_v41, %v3531_v33 }
0x1b0b   :  { %2174 = vst [vmem:[#allocation9 + $0x70] sm:$0xff] %v2158_v38 }
0x1b0c   :  { %v2159_v49 = vsub.f32 %v3468_v57, %v2143_v42 }
0x1b0e   :  { %2175 = vst [vmem:[#allocation9 + $0x78] sm:$0xff] %v2159_v49 }
0x1b0f   :  { %2781 = shalt.err (!%p2778_p5)
}
0x1b10   :  { %2187 = dma.vmem_to_hbm [thread:$0]  %s2182_s29, 2048, %s3580_s7, [#allocation5], %s2797_s27, %s2797_s27, %s2798_s28  }
0x1b11   :  { %2794 = dma.done.wait [#allocation5], 2048  }
0x1b12   :  { %2795 = vsyncadd [#allocation5], 4294965248 }
0x1b13   :  { %2191 = vsyncpa [#allocation4], 1 }
0x1b14   :  { %2192 = vsyncpa [#allocation7], 1 }
0x1b15   :  { %2193 = vsyncpa [#allocation5], 1 }

</bundles_post_ra>
